<compile_context>
chip_gen: v7x
topology: tpu7x:2x2x1
jax: 0.10.0
libtpu: 0.0.40
codegen_flags: <defaults>
</compile_context>

<pallas_src>
import jax
import jax.numpy as jnp
from jax.experimental import pallas as pl
from jax.experimental.pallas import tpu as pltpu

SH_DEGREE = 3
SH_DIM = (SH_DEGREE + 1) ** 2          # 16
HIDDEN = 32
OUT_FEATURES = 8

# Per-basis multiplicative constants of rsh_cart_3 (folded into W1 offline).
_SH_SCALE = jnp.array(
    [0.282094791773878,
     -0.48860251190292, 0.48860251190292, -0.48860251190292,
     1.09254843059208, -1.09254843059208, 0.94617469575756,
     -1.09254843059208, 0.54627421529604,
     -0.590043589926644, 2.89061144264055, 0.304697199642977,
     0.373176332590115, 0.304697199642977, 1.44530572132028,
     -0.590043589926644],
    dtype=jnp.float32)
# Additive constant of basis #6 (0.94617*z^2 - 0.31539) (folded into b1 offline).
_SH_OFFSET = jnp.zeros((SH_DIM,), jnp.float32).at[6].set(-0.31539156525252)


def project_sh_kernel(dir_ref, w1_ref, b1_ref, w2_ref, b2_ref, out_ref):
    # dir_ref: (3, T) with T on the lane axis.
    x = dir_ref[0:1, :]                        # (1, T)
    y = dir_ref[1:2, :]
    z = dir_ref[2:3, :]
    ones = jnp.ones_like(x)

    x2, y2, z2 = x * x, y * y, z * z
    xy, yz, xz = x * y, y * z, x * z

    # Raw (unscaled) rsh_cart_3 basis rows, stacked along the SUBLANE axis.
    basis = jnp.concatenate(
        [
            ones, y, z, x,
            xy, yz, z2, xz, x2 - y2,
            y * (3.0 * x2 - y2),
            xy * z,
            y * (1.0 - 5.0 * z2),
            z * (5.0 * z2 - 3.0),
            x * (1.0 - 5.0 * z2),
            z * (x2 - y2),
            x * (x2 - 3.0 * y2),
        ],
        axis=0,
    )                                           # (16, T)

    # Linear(16 -> HIDDEN) + ReLU   (SH scales already folded into w1/b1)
    h = jnp.dot(w1_ref[...], basis, preferred_element_type=jnp.float32)  # (H, T)
    h = jnp.maximum(h + b1_ref[...], 0.0)

    # Linear(HIDDEN -> OUT), Identity output activation.
    o = jnp.dot(w2_ref[...], h, preferred_element_type=jnp.float32) + b2_ref[...]
    out_ref[...] = o.astype(out_ref.dtype)      # (OUT, T) lane-dense store


def project_sh(dirs, w1, b1, w2, b2, *, tile_n=8192):
    """dirs: (N, 3).  w1: (HIDDEN, SH_DIM), b1: (HIDDEN,), w2: (OUT, HIDDEN),
    b2: (OUT,)  -- PyTorch nn.Linear (out_features, in_features) layout."""
    N = dirs.shape[0]
    n_pad = pl.cdiv(N, tile_n) * tile_n
    grid = (n_pad // tile_n,)

    # Pad ragged N and transpose so N is the lane (last) dimension.
    dirs_t = jnp.pad(dirs, ((0, n_pad - N), (0, 0))).T          # (3, n_pad)

    # Fold the SH constants into the first linear layer.
    w1f = w1 * _SH_SCALE[None, :]                               # (H, 16)
    b1f = (b1 + w1 @ _SH_OFFSET)[:, None]                       # (H, 1)
    b2f = b2[:, None]                                           # (OUT, 1)

    out_t = pl.pallas_call(
        project_sh_kernel,
        out_shape=jax.ShapeDtypeStruct((OUT_FEATURES, n_pad), dirs.dtype),
        grid_spec=pltpu.PrefetchScalarGridSpec(
            num_scalar_prefetch=0,
            grid=grid,
            in_specs=[
                pl.BlockSpec((3, tile_n), lambda i: (0, i)),
                pl.BlockSpec((HIDDEN, SH_DIM), lambda i: (0, 0)),
                pl.BlockSpec((HIDDEN, 1), lambda i: (0, 0)),
                pl.BlockSpec((OUT_FEATURES, HIDDEN), lambda i: (0, 0)),
                pl.BlockSpec((OUT_FEATURES, 1), lambda i: (0, 0)),
            ],
            out_specs=pl.BlockSpec((OUT_FEATURES, tile_n), lambda i: (0, i)),
        ),
        compiler_params=pltpu.CompilerParams(
            dimension_semantics=("parallel",)),
    )(dirs_t, w1f, b1f, w2, b2f)

    return out_t.T[:N]                                          # (N, OUT)


def _torch_linear_init(key, fan_in, fan_out):
    """Deterministic emulation of torch.nn.Linear default init.
    Returns W of shape (fan_out, fan_in) and b of shape (fan_out,)."""
    kw, kb = jax.random.split(key)
    bound = 1.0 / jnp.sqrt(fan_in)
    w = jax.random.uniform(kw, (fan_out, fan_in), jnp.float32, -bound, bound)
    b = jax.random.uniform(kb, (fan_out,), jnp.float32, -bound, bound)
    return w, b


def _reference(dirs, w1, b1, w2, b2):
    """Pure-JAX reference: full (unfolded) rsh_cart_3 + 2-layer MLP."""
    x = dirs[:, 0:1]; y = dirs[:, 1:2]; z = dirs[:, 2:3]
    ones = jnp.ones_like(x)
    x2, y2, z2 = x * x, y * y, z * z
    xy, yz, xz = x * y, y * z, x * z
    coeffs = jnp.concatenate([
        0.282094791773878 * ones,
        -0.48860251190292 * y,
        0.48860251190292 * z,
        -0.48860251190292 * x,
        1.09254843059208 * xy,
        -1.09254843059208 * yz,
        0.94617469575756 * z2 - 0.31539156525252,
        -1.09254843059208 * xz,
        0.54627421529604 * x2 - 0.54627421529604 * y2,
        -0.590043589926644 * y * (3.0 * x2 - y2),
        2.89061144264055 * xy * z,
        0.304697199642977 * y * (1.0 - 5.0 * z2),
        0.373176332590115 * z * (5.0 * z2 - 3.0),
        0.304697199642977 * x * (1.0 - 5.0 * z2),
        1.44530572132028 * z * (x2 - y2),
        -0.590043589926644 * x * (x2 - 3.0 * y2),
    ], axis=-1)                                                  # (N, 16)
    h = jnp.maximum(coeffs @ w1.T + b1, 0.0)
    return h @ w2.T + b2


if __name__ == "__main__":
    key = jax.random.PRNGKey(0)
    k_dir, k_l1, k_l2 = jax.random.split(key, 3)

    # Ragged N (not a multiple of tile_n) to exercise the padded/cdiv grid path,
    # with tile_n=2048 so the demo runs a multi-step grid (feeds both v7x TCs).
    N = 5000
    dirs = jax.random.normal(k_dir, (N, 3), jnp.float32)
    dirs = dirs / jnp.linalg.norm(dirs, axis=-1, keepdims=True)  # unit view dirs

    w1, b1 = _torch_linear_init(k_l1, SH_DIM, HIDDEN)
    w2, b2 = _torch_linear_init(k_l2, HIDDEN, OUT_FEATURES)

    out = project_sh(dirs, w1, b1, w2, b2, tile_n=2048)
    out = jax.block_until_ready(out)

    ref = _reference(dirs, w1, b1, w2, b2)
    assert out.shape == (N, OUT_FEATURES)
    assert jnp.allclose(out, ref, atol=1e-5, rtol=1e-5)

    print("KERNEL_OK")
</pallas_src>

<mosaic_0001>
module attributes {stable_mosaic.version = 11 : i64} {
  func.func @project_sh_kernel(%arg0: i32, %arg1: memref<3x2048xf32, #tpu.memory_space<vmem>>, %arg2: memref<32x16xf32, #tpu.memory_space<vmem>>, %arg3: memref<32x1xf32, #tpu.memory_space<vmem>>, %arg4: memref<8x32xf32, #tpu.memory_space<vmem>>, %arg5: memref<8x1xf32, #tpu.memory_space<vmem>>, %arg6: memref<8x2048xf32, #tpu.memory_space<vmem>>) attributes {dimension_semantics = [#tpu.dimension_semantics<parallel>], iteration_bounds = array<i64: 3>, scalar_prefetch = 0 : i64, scratch_operands = 0 : i64, tpu.core_type = #tpu.core_type<tc>, window_params = [{transform_indices = @transform_0, window_bounds = array<i64: 3, 2048>}, {pipeline_mode = #tpu.pipeline_mode<synchronous>, transform_indices = @transform_1, window_bounds = array<i64: 32, 16>}, {pipeline_mode = #tpu.pipeline_mode<synchronous>, transform_indices = @transform_2, window_bounds = array<i64: 32, 1>}, {pipeline_mode = #tpu.pipeline_mode<synchronous>, transform_indices = @transform_3, window_bounds = array<i64: 8, 32>}, {pipeline_mode = #tpu.pipeline_mode<synchronous>, transform_indices = @transform_4, window_bounds = array<i64: 8, 1>}, {transform_indices = @transform_5, window_bounds = array<i64: 8, 2048>}]} {
    %c0 = arith.constant 0 : index
    %c0_0 = arith.constant 0 : index
    %0 = vector.load %arg1[%c0, %c0_0] : memref<3x2048xf32, #tpu.memory_space<vmem>>, vector<1x2048xf32>
    %c1 = arith.constant 1 : index
    %c0_1 = arith.constant 0 : index
    %1 = vector.load %arg1[%c1, %c0_1] : memref<3x2048xf32, #tpu.memory_space<vmem>>, vector<1x2048xf32>
    %c2 = arith.constant 2 : index
    %c0_2 = arith.constant 0 : index
    %2 = vector.load %arg1[%c2, %c0_2] : memref<3x2048xf32, #tpu.memory_space<vmem>>, vector<1x2048xf32>
    %cst = arith.constant 1.000000e+00 : f32
    %3 = vector.broadcast %cst : f32 to vector<1x2048xf32>
    %4 = arith.mulf %0, %0 : vector<1x2048xf32>
    %5 = arith.mulf %1, %1 : vector<1x2048xf32>
    %6 = arith.mulf %2, %2 : vector<1x2048xf32>
    %7 = arith.mulf %0, %1 : vector<1x2048xf32>
    %8 = arith.mulf %1, %2 : vector<1x2048xf32>
    %9 = arith.mulf %0, %2 : vector<1x2048xf32>
    %10 = arith.subf %4, %5 : vector<1x2048xf32>
    %cst_3 = arith.constant 3.000000e+00 : f32
    %11 = vector.broadcast %cst_3 : f32 to vector<1x2048xf32>
    %12 = arith.mulf %11, %4 : vector<1x2048xf32>
    %13 = arith.subf %12, %5 : vector<1x2048xf32>
    %14 = arith.mulf %1, %13 : vector<1x2048xf32>
    %15 = arith.mulf %7, %2 : vector<1x2048xf32>
    %cst_4 = arith.constant 5.000000e+00 : f32
    %16 = vector.broadcast %cst_4 : f32 to vector<1x2048xf32>
    %17 = arith.mulf %16, %6 : vector<1x2048xf32>
    %cst_5 = arith.constant 1.000000e+00 : f32
    %18 = vector.broadcast %cst_5 : f32 to vector<1x2048xf32>
    %19 = arith.subf %18, %17 : vector<1x2048xf32>
    %20 = arith.mulf %1, %19 : vector<1x2048xf32>
    %cst_6 = arith.constant 5.000000e+00 : f32
    %21 = vector.broadcast %cst_6 : f32 to vector<1x2048xf32>
    %22 = arith.mulf %21, %6 : vector<1x2048xf32>
    %cst_7 = arith.constant 3.000000e+00 : f32
    %23 = vector.broadcast %cst_7 : f32 to vector<1x2048xf32>
    %24 = arith.subf %22, %23 : vector<1x2048xf32>
    %25 = arith.mulf %2, %24 : vector<1x2048xf32>
    %cst_8 = arith.constant 5.000000e+00 : f32
    %26 = vector.broadcast %cst_8 : f32 to vector<1x2048xf32>
    %27 = arith.mulf %26, %6 : vector<1x2048xf32>
    %cst_9 = arith.constant 1.000000e+00 : f32
    %28 = vector.broadcast %cst_9 : f32 to vector<1x2048xf32>
    %29 = arith.subf %28, %27 : vector<1x2048xf32>
    %30 = arith.mulf %0, %29 : vector<1x2048xf32>
    %31 = arith.subf %4, %5 : vector<1x2048xf32>
    %32 = arith.mulf %2, %31 : vector<1x2048xf32>
    %cst_10 = arith.constant 3.000000e+00 : f32
    %33 = vector.broadcast %cst_10 : f32 to vector<1x2048xf32>
    %34 = arith.mulf %33, %5 : vector<1x2048xf32>
    %35 = arith.subf %4, %34 : vector<1x2048xf32>
    %36 = arith.mulf %0, %35 : vector<1x2048xf32>
    %37 = tpu.concatenate %3, %1, %2, %0, %7, %8, %6, %9, %10, %14, %15, %20, %25, %30, %32, %36 in 0 : vector<1x2048xf32>, vector<1x2048xf32>, vector<1x2048xf32>, vector<1x2048xf32>, vector<1x2048xf32>, vector<1x2048xf32>, vector<1x2048xf32>, vector<1x2048xf32>, vector<1x2048xf32>, vector<1x2048xf32>, vector<1x2048xf32>, vector<1x2048xf32>, vector<1x2048xf32>, vector<1x2048xf32>, vector<1x2048xf32>, vector<1x2048xf32> -> vector<16x2048xf32>
    %c0_11 = arith.constant 0 : index
    %c0_12 = arith.constant 0 : index
    %38 = vector.load %arg2[%c0_11, %c0_12] : memref<32x16xf32, #tpu.memory_space<vmem>>, vector<32x16xf32>
    %cst_13 = arith.constant dense<0.000000e+00> : vector<32x2048xf32>
    %39 = tpu.matmul %38, %37, %cst_13 {dimension_numbers = #tpu.dot_dimension_numbers<[1], [0], [0], [1], [0, 0, 1, 1], [], []>} : vector<32x16xf32>, vector<16x2048xf32>, vector<32x2048xf32> -> vector<32x2048xf32>
    %c0_14 = arith.constant 0 : index
    %c0_15 = arith.constant 0 : index
    %40 = vector.load %arg3[%c0_14, %c0_15] : memref<32x1xf32, #tpu.memory_space<vmem>>, vector<32x1xf32>
    %41 = vector.broadcast %40 : vector<32x1xf32> to vector<32x2048xf32>
    %42 = arith.addf %39, %41 : vector<32x2048xf32>
    %cst_16 = arith.constant 0.000000e+00 : f32
    %43 = vector.broadcast %cst_16 : f32 to vector<32x2048xf32>
    %44 = arith.maximumf %42, %43 : vector<32x2048xf32>
    %c0_17 = arith.constant 0 : index
    %c0_18 = arith.constant 0 : index
    %45 = vector.load %arg4[%c0_17, %c0_18] : memref<8x32xf32, #tpu.memory_space<vmem>>, vector<8x32xf32>
    %cst_19 = arith.constant dense<0.000000e+00> : vector<8x2048xf32>
    %46 = tpu.matmul %45, %44, %cst_19 {dimension_numbers = #tpu.dot_dimension_numbers<[1], [0], [0], [1], [0, 0, 1, 1], [], []>} : vector<8x32xf32>, vector<32x2048xf32>, vector<8x2048xf32> -> vector<8x2048xf32>
    %c0_20 = arith.constant 0 : index
    %c0_21 = arith.constant 0 : index
    %47 = vector.load %arg5[%c0_20, %c0_21] : memref<8x1xf32, #tpu.memory_space<vmem>>, vector<8x1xf32>
    %48 = vector.broadcast %47 : vector<8x1xf32> to vector<8x2048xf32>
    %49 = arith.addf %46, %48 : vector<8x2048xf32>
    %c0_22 = arith.constant 0 : index
    %c0_23 = arith.constant 0 : index
    %50 = vector.load %arg6[%c0_22, %c0_23] : memref<8x2048xf32, #tpu.memory_space<vmem>>, vector<8x2048xf32>
    tpu.vector_store %arg6[%c0_22, %c0_23], %49 {strides = array<i32>} : memref<8x2048xf32, #tpu.memory_space<vmem>>, vector<8x2048xf32>,
    return
  }
  func.func @transform_0(%arg0: i32) -> (i32, i32) {
    %c0_i32 = arith.constant 0 : i32
    %c0_i32_0 = arith.constant 0 : i32
    return %c0_i32, %arg0 : i32, i32
  }
  func.func @transform_1(%arg0: i32) -> (i32, i32) {
    %c0_i32 = arith.constant 0 : i32
    %c0_i32_0 = arith.constant 0 : i32
    %c0_i32_1 = arith.constant 0 : i32
    return %c0_i32, %c0_i32_0 : i32, i32
  }
  func.func @transform_2(%arg0: i32) -> (i32, i32) {
    %c0_i32 = arith.constant 0 : i32
    %c0_i32_0 = arith.constant 0 : i32
    %c0_i32_1 = arith.constant 0 : i32
    return %c0_i32, %c0_i32_0 : i32, i32
  }
  func.func @transform_3(%arg0: i32) -> (i32, i32) {
    %c0_i32 = arith.constant 0 : i32
    %c0_i32_0 = arith.constant 0 : i32
    %c0_i32_1 = arith.constant 0 : i32
    return %c0_i32, %c0_i32_0 : i32, i32
  }
  func.func @transform_4(%arg0: i32) -> (i32, i32) {
    %c0_i32 = arith.constant 0 : i32
    %c0_i32_0 = arith.constant 0 : i32
    %c0_i32_1 = arith.constant 0 : i32
    return %c0_i32, %c0_i32_0 : i32, i32
  }
  func.func @transform_5(%arg0: i32) -> (i32, i32) {
    %c0_i32 = arith.constant 0 : i32
    %c0_i32_0 = arith.constant 0 : i32
    return %c0_i32, %arg0 : i32, i32
  }
}

</mosaic_0001>

<bundles_post_ra>
// kernel: tpu_custom_call.1
= control target key start
LH: loop header
LB: loop body
LE: loop exit
PB: predicated region body
PF: predicated region fallthrough
CT: control target
= control target key end

     0   :  { %10 = vsyncpa [#allocation3], 0  ;;  %s4838_s0 = inlined_call_operand.hbm [shape: f32[3,6144], index: 0, kind: input, shape index: {}]   ;;  %s4839_s1 = inlined_call_operand.vmem [shape: f32[32,16], index: 1, kind: input, shape index: {}]   ;;  %s4840_s2 = inlined_call_operand.vmem [shape: f32[32,1], index: 2, kind: input, shape index: {}]   ;;  %s4841_s3 = inlined_call_operand.vmem [shape: f32[8,32], index: 3, kind: input, shape index: {}]   ;;  %s4842_s4 = inlined_call_operand.vmem [shape: f32[8,1], index: 4, kind: input, shape index: {}]   ;;  %s4843_s5 = inlined_call_operand.hbm [shape: f32[8,6144], index: 5, kind: output, shape index: {}]  }
   0x1   :  { %12 = vsyncpa [#allocation3 + $0x1], 0 }
   0x2   :  { %13 = vsyncpa [#allocation4], 0 }
   0x3   :  { %15 = vsyncpa [#allocation4 + $0x1], 0  ;;  %s3595_s18 = smov 0   ;;  %s3597_s19 = smov 0  }
   0x4   :  { %s3599_s20 = smov 0   ;;  %s3601_s21 = smov 0  }
   0x5 LB: > { %s3616_s22 = sadd.s32 4294967295, %s3559_s21   ;;  %s3254_s23 = sadd.s32 4294967294, %s3559_s21   ;;  %s3559_s21 = sphi %s3601_s21, %s4857_s21   ;;  %s3555_s20 = sphi %s3599_s20, %s4856_s20   ;;  %s3551_s19 = sphi %s3597_s19, %s4855_s19   ;;  %s3547_s18 = sphi %s3595_s18, %s4854_s18  }
   0x6   : > { %s3620_s24 = sadd.s32 1, %s3559_s21   ;;  %s28_s25 = sadd.s32 1, %s3555_s20 }
   0x7   : > { %s25_s26 = ssub.s32 %s3559_s21, %s3620_s24  ;;  %p35_p0 = scmp.ne.s32.totalorder %s3555_s20, %s3551_s19 }
   0x8   : > { %p26_p1 = scmp.eq.s32.totalorder %s25_s26, 0  ;;  %p36_p2 = scmp.eq.s32.totalorder %s3559_s21, 0 }
   0x9   : > { %p41_p3 = scmp.ne.s32.totalorder %s3551_s19, %s3547_s18  ;;  %p42_p4 = scmp.eq.s32.totalorder %s3616_s22, 0 }
   0xa   : > { %s3632_s27 = scalar_select %p26_p1, %s3555_s20, %s28_s25  }
   0xb   : > { %p3634_p5 = por %p36_p2, %p35_p0  ;;  %p3638_p6 = por %p42_p4, %p41_p3 }
   0xc   : > { %p149_p7 = scmp.eq.s32.totalorder %s3616_s22, 2  ;;  %p155_p8 = scmp.eq.s32.totalorder %s3254_s23, 2 }
   0xd   : > { %p3425_p9 = scmp.lt.s32.totalorder %s3559_s21, 3  ;;  %s187_s7 = sand.u32 1, %s3555_s20  }
   0xe   : > { %p3644_p10 = por %p149_p7, %p35_p0  ;;  %p3648_p11 = por %p155_p8, %p41_p3 }
   0xf   : > { %s3315_s8 = sshll.u32 %s3559_s21, 10  ;;  %s3257_s9 = sshll.u32 %s187_s7, 6 }
  0x10   : > { %s4847_s30 = scalar_select %p3644_p10, 1, 0 }
  0x11   : > { %s4848_s6 = scalar_select %p3648_p11, 1, 0 }
  0x12   : > { %s3657_s12 = scalar_lea.hbm %s4838_s0, %s3315_s8  ;;  %s191_s13 = scalar_lea.vmem [#allocation2], %s3257_s9 }
  0x13   : > { %s199_s14 = sshll.u32 %s191_s13, 4  ;;  %p3661_p12 = pnand %p3425_p9, %p3634_p5  ;;  %s3665_s14 = int_to_ptr.vmem [resolvable:$true] %s199_s14 }
  0x14   : > { %s188_s16 = scalar_lea.sflag [#allocation3], %s187_s7  ;;  %s3463_s17 = scalar_lea.hbm %s3657_s12, 1024 }
  0x15   : > { %p3464_p1 = scmp.ne.s32.totalorder %s3657_s12, %s3463_s17  ;;  %p3465_p2 = pneg %p3661_p12 }
  0x16   : > { %s3468_s26 = scalar_lea.hbm %s4838_s0, 3072  ;;  %p3469_p5 = scmp.lt.u32.totalorder %s3657_s12, %s4838_s0 }
  0x17   : > { %p3466_p3 = pnand %p3465_p2, %p3464_p1  ;;  %p3470_p7 = scmp.lt.u32.totalorder %s3468_s26, %s3463_s17 }
  0x18   : > { %p3472_p9 = scmp.lt.u32.totalorder %s3463_s17, %s3657_s12 }
  0x19   : > { %p3467_p4 = pneg %p3466_p3  ;;  %p3471_p8 = por %p3470_p7, %p3469_p5 }
  0x1b   : > { %p3473_p13 = por %p3472_p9, %p3471_p8 }
  0x1d   : > { %p3474_p0 = pnand %p3473_p13, %p3467_p4 }
  0x1f   : > { %3477 = shalt.err (!%p3474_p0)
}
  0x20   : > { %s3478_s7 = scalar_lea.vmem %s3665_s14, 1024  ;;  %s3561_s9 = smov [#allocation2]  }
  0x21   : > { %p3479_p1 = scmp.ne.s32.totalorder %s3665_s14, %s3478_s7  ;;  %s3483_s10 = sshll.u32 %s3561_s9, 4  ;;  %s3484_s10 = int_to_ptr.vmem [resolvable:$false] %s3483_s10 }
  0x22   : > { %s3485_s11 = scalar_lea.vmem %s3484_s10, 2048  ;;  %p3486_p10 = scmp.lt.s32.totalorder %s3665_s14, %s3484_s10 }
  0x23   : > { %p3481_p3 = pnand %p3479_p1, %p3465_p2  ;;  %p3487_p5 = scmp.lt.s32.totalorder %s3485_s11, %s3478_s7 }
  0x25   : > { %p3482_p11 = pneg %p3481_p3  ;;  %p3488_p7 = por %p3487_p5, %p3486_p10 }
  0x27   : > { %p3489_p8 = pnand %p3488_p7, %p3482_p11 }
  0x29   : > { %3492 = shalt.err (!%p3489_p8)
}
  0x2a   : > { %3420 = dma.hbm_to_vmem [thread:$0]  (!%p3661_p12), %s3657_s12, 1024, %s3665_s14, %s188_s16  }
  0x2b   : > { %p4850_p13 = scmp.lt.s32.totalorder %s3559_s21, 4  ;;  %p4851_p0 = scmp.ge.s32.totalorder %s3559_s21, 1 }
  0x2d   : > { %p205_p2 = pnand %p4851_p0, %p4850_p13 }
  0x2e   : > { %s3699_s13 = sand.u32 (!%p205_p2), 1, %s3551_s19  }
  0x2f   : > { %208 = sbr.rel (%p205_p2) target bundleno = 662 (0x296), region = 40  ;;  %s3261_s17 = sshll.u32 (!%p205_p2), %s3699_s13, 6 }
  0x30   : > { %s211_s23 = scalar_lea.sflag (!%p205_p2), [#allocation3], %s3699_s13  ;;  %s3703_s25 = scalar_lea.vmem (!%p205_p2), [#allocation2], %s3261_s17 }
  0x36   : > { %3538 = dma.done.wait (%p3638_p6), %s211_s23, 1024  }
  0x37   : > { %3540 = vsyncadd (%p3638_p6), %s211_s23, 4294966272  ;;  %v298_v0 = vlaneseq  ;;  %v3562_v2 = vmov 0.0   ;;  %vm1526_vm0 = vcmask 1040384   ;;  %vm1543_vm1 = vcmask 1041408   ;;  %v3728_v11 = vld [vmem:[%s3703_s25] ss:$4 sm:$0xff] }
  0x38   : > { %1862 = vmatprep.mubr.f32.mxu0 %v3562_v2  ;;  %1951 = vmatprep.mubr.f32.mxu1 %v3562_v2  ;;  %v3731_v12 = vld [vmem:[%s3703_s25 + $0x1] ss:$4 sm:$0xff]  ;;  %v3734_v13 = vld [vmem:[%s3703_s25 + $0x2] ss:$4 sm:$0xff]  ;;  %vm1560_vm2 = vcmask 1042432   ;;  %v254_v14 = vmul.f32 %v3728_v11, %v3728_v11  ;;  %vm1577_vm3 = vcmask 1043456  }
  0x39   : > { %v299_v1 = vshrl.u32 %v298_v0, 7  ;;  %v256_v15 = vmul.f32 %v3731_v12, %v3731_v12  ;;  %v3742_v16 = vmul.f32 %v3734_v13, %v3734_v13  ;;  %v3746_v17 = vmul.f32 %v3731_v12, %v3728_v11  ;;  %s3262_s26 = sshll.u32 %s3699_s13, 7  ;;  %s3316_s8 = sshll.u32 %s3616_s22, 11 }
  0x3a   : > { %v3750_v18 = vmul.f32 %v3734_v13, %v3731_v12  ;;  %v3754_v19 = vmul.f32 %v3734_v13, %v3728_v11  ;;  %vm1594_vm4 = vcmask 1044480   ;;  %v268_v23 = vmul.f32 3.0, %v254_v14  ;;  %s4772_s28 = scalar_lea.vmem [#allocation5], %s3262_s26  ;;  %s4793_s11 = scalar_lea.hbm %s4843_s5, %s3316_s8 }
  0x3b   : > { %v3711_v3 = vsub.s32 1, %v299_v1  ;;  %v3713_v4 = vsub.s32 3, %v299_v1  ;;  %v3715_v5 = vsub.s32 0, %v299_v1  ;;  %v3717_v6 = vsub.s32 2, %v299_v1  ;;  %s3184_s7 = sshll.u32 %s4772_s28, 4  ;;  %s3170_s17 = scalar_lea.sflag [#allocation4], %s3699_s13  ;;  %s4795_s7 = int_to_ptr.vmem [resolvable:$true] %s3184_s7 }
  0x3c   : > { %v3719_v7 = vsub.s32 5, %v299_v1  ;;  %v3721_v8 = vsub.s32 7, %v299_v1  ;;  %v3723_v9 = vsub.s32 4, %v299_v1  ;;  %v3725_v10 = vsub.s32 6, %v299_v1  ;;  %s3493_s23 = scalar_lea.vmem %s4795_s7, 2048  ;;  %p4852_p10 = scmp.ne.s32.totalorder %s4847_s30, 0 }
  0x3d   : > { %v305_v20 = vrot.slane %v3731_v12, %v3711_v3  ;;  %v387_v21 = vrot.slane %v3734_v13, %v3711_v3  ;;  %v3760_v22 = vsub.f32 %v254_v14, %v256_v15  ;;  %v3764_v24 = vmul.f32 %v3734_v13, %v3746_v17  ;;  %p3494_p6 = scmp.ne.s32.totalorder %s4795_s7, %s3493_s23  ;;  %s3564_s22 = smov [#allocation5]  }
  0x3e   : > { %v276_v25 = vmul.f32 5.0, %v3742_v16  ;;  %vm1611_vm5 = vcmask 1045504   ;;  %v290_v26 = vmul.f32 3.0, %v256_v15  ;;  %v469_v27 = vrot.slane %v3728_v11, %v3711_v3 }
  0x3f   : > { %v551_v28 = vrot.slane %v3746_v17, %v3711_v3  ;;  %v633_v29 = vrot.slane %v3750_v18, %v3711_v3  ;;  %vm1628_vm6 = vcmask 1046528   ;;  %v270_v30 = vsub.f32 %v268_v23, %v256_v15  ;;  %p3495_p11 = pnand %p3494_p6, %p4852_p10 }
  0x40   : > { %v278_v31 = vsub.f32 1.0, %v276_v25  ;;  %v3268_v32 = vadd.f32 -3.0, %v276_v25  ;;  %v3775_v33 = vmul.f32 %v3734_v13, %v3760_v22  ;;  %v292_v34 = vsub.f32 %v254_v14, %v290_v26 }
  0x41   : > { %v715_v35 = vrot.slane %v3742_v16, %v3711_v3  ;;  %v797_v36 = vrot.slane %v3754_v19, %v3711_v3  ;;  %v879_v37 = vrot.slane %v3760_v22, %v3711_v3  ;;  %v3784_v38 = vmul.f32 %v3731_v12, %v270_v30  ;;  %p3496_p12 = pneg %p3495_p11 }
  0x42   : > { %v3787_v39 = vmul.f32 %v3731_v12, %v278_v31  ;;  %v3790_v40 = vmul.f32 %v3268_v32, %v3734_v13  ;;  %v3793_v41 = vmul.f32 %v278_v31, %v3728_v11  ;;  %v3796_v42 = vmul.f32 %v292_v34, %v3728_v11 }
  0x43   : > { %v1043_v43 = vrot.slane %v3764_v24, %v3711_v3  ;;  %v1371_v44 = vrot.slane %v3775_v33, %v3711_v3  ;;  %v1528_v45 = vsel %vm1526_vm0, 1.0, %v305_v20  ;;  %v961_v46 = vrot.slane %v3784_v38, %v3711_v3 }
  0x44   : > { %v1125_v47 = vrot.slane %v3787_v39, %v3711_v3  ;;  %v1207_v48 = vrot.slane %v3790_v40, %v3711_v3  ;;  %v1289_v49 = vrot.slane %v3793_v41, %v3711_v3  ;;  %v1453_v50 = vrot.slane %v3796_v42, %v3711_v3 }
  0x45   : > { %v1545_v51 = vsel %vm1543_vm1, %v1528_v45, %v387_v21  ;;  %v313_v52 = vrot.slane %v3731_v12, %v3713_v4  ;;  %v395_v53 = vrot.slane %v3734_v13, %v3713_v4  ;;  %v1646_v55 = vsel %vm1526_vm0, %v879_v37, %v961_v46 }
  0x46   : > { %v1562_v54 = vsel %vm1560_vm2, %v1545_v51, %v469_v27  ;;  %v477_v56 = vrot.slane %v3728_v11, %v3713_v4  ;;  %v559_v57 = vrot.slane %v3746_v17, %v3713_v4  ;;  %v1662_v59 = vsel %vm1543_vm1, %v1646_v55, %v1043_v43 }
  0x47   : > { %v1579_v58 = vsel %vm1577_vm3, %v1562_v54, %v551_v28  ;;  %v641_v60 = vrot.slane %v3750_v18, %v3713_v4  ;;  %v723_v61 = vrot.slane %v3742_v16, %v3713_v4  ;;  %v1678_v63 = vsel %vm1560_vm2, %v1662_v59, %v1125_v47 }
  0x48   : > { %v1596_v62 = vsel %vm1594_vm4, %v1579_v58, %v633_v29  ;;  %v805_v0 = vrot.slane %v3754_v19, %v3713_v4  ;;  %v887_v1 = vrot.slane %v3760_v22, %v3713_v4  ;;  %v1694_v15 = vsel %vm1577_vm3, %v1678_v63, %v1207_v48 }
  0x49   : > { %v1613_v14 = vsel %vm1611_vm5, %v1596_v62, %v715_v35  ;;  %v969_v20 = vrot.slane %v3784_v38, %v3713_v4  ;;  %v1051_v21 = vrot.slane %v3764_v24, %v3713_v4  ;;  %v1710_v25 = vsel %vm1594_vm4, %v1694_v15, %v1289_v49 }
  0x4a   : > { %v1630_v23 = vsel %vm1628_vm6, %v1613_v14, %v797_v36  ;;  %v1133_v26 = vrot.slane %v3787_v39, %v3713_v4  ;;  %v1215_v27 = vrot.slane %v3790_v40, %v3713_v4  ;;  %v1726_v28 = vsel %vm1611_vm5, %v1710_v25, %v1371_v44 }
  0x4b   : > { %v1297_v29 = vrot.slane %v3793_v41, %v3713_v4  ;;  %v1379_v30 = vrot.slane %v3775_v33, %v3713_v4  ;;  %v1461_v31 = vrot.slane %v3796_v42, %v3713_v4  ;;  %v1742_v32 = vsel %vm1628_vm6, %v1726_v28, %v1453_v50 }
  0x4c   : > { %v1530_v34 = vsel %vm1526_vm0, 1.0, %v313_v52  ;;  %v1648_v35 = vsel %vm1526_vm0, %v887_v1, %v969_v20  ;;  %v301_v36 = vrot.slane %v3731_v12, %v3715_v5  ;;  %v3317_v37 = vpack.c.bf16 %v1742_v32, %v1630_v23 }
  0x4d   : > { %v1547_v43 = vsel %vm1543_vm1, %v1530_v34, %v395_v53  ;;  %v1664_v44 = vsel %vm1543_vm1, %v1648_v35, %v1051_v21  ;;  %v383_v45 = vrot.slane %v3734_v13, %v3715_v5  ;;  %v465_v48 = vrot.slane %v3728_v11, %v3715_v5 }
  0x4e   : > { %v1564_v46 = vsel %vm1560_vm2, %v1547_v43, %v477_v56  ;;  %v1680_v47 = vsel %vm1560_vm2, %v1664_v44, %v1133_v26  ;;  %v547_v49 = vrot.slane %v3746_v17, %v3715_v5  ;;  %3318 = vmatprep.subr.bf16.mxu0 %v3317_v37  ;;  %v629_v52 = vrot.slane %v3750_v18, %v3715_v5 }
  0x4f   : > { %v1581_v50 = vsel %vm1577_vm3, %v1564_v46, %v559_v57  ;;  %v1696_v51 = vsel %vm1577_vm3, %v1680_v47, %v1215_v27  ;;  %v711_v53 = vrot.slane %v3742_v16, %v3715_v5  ;;  %v793_v56 = vrot.slane %v3754_v19, %v3715_v5 }
  0x50   : > { %v1598_v54 = vsel %vm1594_vm4, %v1581_v50, %v641_v60  ;;  %v1712_v55 = vsel %vm1594_vm4, %v1696_v51, %v1297_v29  ;;  %v875_v58 = vrot.slane %v3760_v22, %v3715_v5  ;;  %v957_v62 = vrot.slane %v3784_v38, %v3715_v5 }
  0x51   : > { %v1615_v57 = vsel %vm1611_vm5, %v1598_v54, %v723_v61  ;;  %v1728_v59 = vsel %vm1611_vm5, %v1712_v55, %v1379_v30  ;;  %v1039_v63 = vrot.slane %v3764_v24, %v3715_v5  ;;  %v1121_v14 = vrot.slane %v3787_v39, %v3715_v5 }
  0x52   : > { %v1632_v60 = vsel %vm1628_vm6, %v1615_v57, %v805_v0  ;;  %v1744_v1 = vsel %vm1628_vm6, %v1728_v59, %v1461_v31  ;;  %v1203_v15 = vrot.slane %v3790_v40, %v3715_v5  ;;  %v1285_v61 = vrot.slane %v3793_v41, %v3715_v5 }
  0x53   : > { %v3321_v20 = vpack.c.bf16 %v1744_v1, %v1632_v60  ;;  %v1367_v21 = vrot.slane %v3775_v33, %v3715_v5  ;;  %v1449_v23 = vrot.slane %v3796_v42, %v3715_v5  ;;  %v1527_v0 = vsel %vm1526_vm0, 1.0, %v301_v36 }
  0x54   : > { %v1645_v25 = vsel %vm1526_vm0, %v875_v58, %v957_v62  ;;  %v309_v26 = vrot.slane %v3731_v12, %v3717_v6  ;;  %v391_v27 = vrot.slane %v3734_v13, %v3717_v6  ;;  %v1544_v28 = vsel %vm1543_vm1, %v1527_v0, %v383_v45 }
  0x55   : > { %3322 = vmatprep.subr.bf16.mxu1 %v3321_v20  ;;  %v1661_v29 = vsel %vm1543_vm1, %v1645_v25, %v1039_v63  ;;  %v473_v30 = vrot.slane %v3728_v11, %v3717_v6  ;;  %v555_v31 = vrot.slane %v3746_v17, %v3717_v6  ;;  %vm1785_vm7 = vcmask 130048  }
  0x56   : > { %v1561_v32 = vsel %vm1560_vm2, %v1544_v28, %v465_v48  ;;  %v1677_v34 = vsel %vm1560_vm2, %v1661_v29, %v1121_v14  ;;  %v637_v35 = vrot.slane %v3750_v18, %v3717_v6  ;;  %v719_v36 = vrot.slane %v3742_v16, %v3717_v6 }
  0x57   : > { %v1578_v37 = vsel %vm1577_vm3, %v1561_v32, %v547_v49  ;;  %v1693_v43 = vsel %vm1577_vm3, %v1677_v34, %v1203_v15  ;;  %v801_v44 = vrot.slane %v3754_v19, %v3717_v6  ;;  %v883_v45 = vrot.slane %v3760_v22, %v3717_v6 }
  0x58   : > { %v1595_v46 = vsel %vm1594_vm4, %v1578_v37, %v629_v52  ;;  %v1709_v47 = vsel %vm1594_vm4, %v1693_v43, %v1285_v61  ;;  %v965_v48 = vrot.slane %v3784_v38, %v3717_v6  ;;  %v1047_v50 = vrot.slane %v3764_v24, %v3717_v6 }
  0x59   : > { %v1612_v49 = vsel %vm1611_vm5, %v1595_v46, %v711_v53  ;;  %v1725_v51 = vsel %vm1611_vm5, %v1709_v47, %v1367_v21  ;;  %v1129_v54 = vrot.slane %v3787_v39, %v3717_v6  ;;  %v1211_v55 = vrot.slane %v3790_v40, %v3717_v6  ;;  %v3957_v21 = vld [vmem:[%s4839_s1] sm:$0xff] }
  0x5a   : > { %v1629_v52 = vsel %vm1628_vm6, %v1612_v49, %v793_v56  ;;  %v1741_v58 = vsel %vm1628_vm6, %v1725_v51, %v1449_v23  ;;  %v1293_v57 = vrot.slane %v3793_v41, %v3717_v6  ;;  %v1375_v59 = vrot.slane %v3775_v33, %v3717_v6  ;;  %v3999_v51 = vld [vmem:[%s4839_s1 + $0x8] sm:$0xff] }
  0x5b   : > { %v3319_v62 = vpack.c.bf16 %v1741_v58, %v1629_v52  ;;  %v1457_v53 = vrot.slane %v3796_v42, %v3717_v6  ;;  %v1529_v63 = vsel %vm1526_vm0, 1.0, %v309_v26  ;;  %v1647_v60 = vsel %vm1526_vm0, %v883_v45, %v965_v48 }
  0x5c   : > { %v1546_v1 = vsel %vm1543_vm1, %v1529_v63, %v391_v27  ;;  %v1663_v56 = vsel %vm1543_vm1, %v1647_v60, %v1047_v50  ;;  %v321_v14 = vrot.slane %v3731_v12, %v3719_v7  ;;  %v403_v15 = vrot.slane %v3734_v13, %v3719_v7 }
  0x5d   : > { %3320 = vmatpush1.bf16.msra.mxu0 %v3319_v62  ;;  %v1563_v20 = vsel %vm1560_vm2, %v1546_v1, %v473_v30  ;;  %v1679_v61 = vsel %vm1560_vm2, %v1663_v56, %v1129_v54  ;;  %v485_v23 = vrot.slane %v3728_v11, %v3719_v7  ;;  %v567_v0 = vrot.slane %v3746_v17, %v3719_v7 }
  0x5e   : > { %v1580_v25 = vsel %vm1577_vm3, %v1563_v20, %v555_v31  ;;  %v1695_v26 = vsel %vm1577_vm3, %v1679_v61, %v1211_v55  ;;  %v649_v27 = vrot.slane %v3750_v18, %v3719_v7  ;;  %v731_v28 = vrot.slane %v3742_v16, %v3719_v7 }
  0x5f   : > { %v1597_v29 = vsel %vm1594_vm4, %v1580_v25, %v637_v35  ;;  %v1711_v30 = vsel %vm1594_vm4, %v1695_v26, %v1293_v57  ;;  %v813_v32 = vrot.slane %v3754_v19, %v3719_v7  ;;  %v895_v34 = vrot.slane %v3760_v22, %v3719_v7 }
  0x60   : > { %v1614_v31 = vsel %vm1611_vm5, %v1597_v29, %v719_v36  ;;  %v1727_v37 = vsel %vm1611_vm5, %v1711_v30, %v1375_v59  ;;  %3270 = vmatmul.mubr.msk.f32.vlgmr.msra.gmra.mrb[0].mxu0 %vm1785_vm7, %v3957_v21  ;;  %v977_v43 = vrot.slane %v3784_v38, %v3719_v7  ;;  %v1059_v35 = vrot.slane %v3764_v24, %v3719_v7 }
  0x61   : > { %v1631_v45 = vsel %vm1628_vm6, %v1614_v31, %v801_v44  ;;  %v1743_v46 = vsel %vm1628_vm6, %v1727_v37, %v1457_v53  ;;  %v1141_v47 = vrot.slane %v3787_v39, %v3719_v7  ;;  %v1223_v36 = vrot.slane %v3790_v40, %v3719_v7  ;;  %1868 = vmatprep.mubr.f32.mxu0 %v3562_v2 }
  0x62   : > { %v3323_v48 = vpack.c.bf16 %v1743_v46, %v1631_v45  ;;  %v1305_v50 = vrot.slane %v3793_v41, %v3719_v7  ;;  %v1387_v49 = vrot.slane %v3775_v33, %v3719_v7  ;;  %v1469_v44 = vrot.slane %v3796_v42, %v3719_v7 }
  0x63   : > { %v1532_v54 = vsel %vm1526_vm0, 1.0, %v321_v14  ;;  %v1650_v55 = vsel %vm1526_vm0, %v895_v34, %v977_v43  ;;  %v329_v52 = vrot.slane %v3731_v12, %v3721_v8  ;;  %v411_v58 = vrot.slane %v3734_v13, %v3721_v8 }
  0x64   : > { %3324 = vmatpush1.bf16.msra.mxu1 %v3323_v48  ;;  %v1549_v57 = vsel %vm1543_vm1, %v1532_v54, %v403_v15  ;;  %v1666_v59 = vsel %vm1543_vm1, %v1650_v55, %v1059_v35  ;;  %v493_v62 = vrot.slane %v3728_v11, %v3721_v8  ;;  %v575_v53 = vrot.slane %v3746_v17, %v3721_v8 }
  0x65   : > { %v1566_v63 = vsel %vm1560_vm2, %v1549_v57, %v485_v23  ;;  %v1682_v60 = vsel %vm1560_vm2, %v1666_v59, %v1141_v47  ;;  %v657_v1 = vrot.slane %v3750_v18, %v3721_v8  ;;  %v739_v56 = vrot.slane %v3742_v16, %v3721_v8  ;;  %3271 = vmatmul.mubr.msk.f32.gmra.mrb[2].mxu0 %vm1785_vm7, %v3999_v51  ;;  %v4031_v23 = vld [vmem:[%s4839_s1 + $0x10] sm:$0xff] }
  0x66   : > { %v1583_v14 = vsel %vm1577_vm3, %v1566_v63, %v567_v0  ;;  %v1698_v15 = vsel %vm1577_vm3, %v1682_v60, %v1223_v36  ;;  %v821_v20 = vrot.slane %v3754_v19, %v3721_v8  ;;  %v903_v61 = vrot.slane %v3760_v22, %v3721_v8  ;;  %1874 = vmatprep.mubr.f32.mxu0 %v3562_v2 }
  0x67   : > { %3274 = vmatmul.mubr.msk.f32.vlgmr.msra.gmra.mrb[0].mxu1 %vm1785_vm7, %v3957_v21  ;;  %v1600_v0 = vsel %vm1594_vm4, %v1583_v14, %v649_v27  ;;  %v1714_v25 = vsel %vm1594_vm4, %v1698_v15, %v1305_v50  ;;  %v985_v26 = vrot.slane %v3784_v38, %v3721_v8  ;;  %v1067_v29 = vrot.slane %v3764_v24, %v3721_v8 }
  0x68   : > { %v1617_v30 = vsel %vm1611_vm5, %v1600_v0, %v731_v28  ;;  %v1730_v34 = vsel %vm1611_vm5, %v1714_v25, %v1387_v49  ;;  %v1149_v31 = vrot.slane %v3787_v39, %v3721_v8  ;;  %v1231_v37 = vrot.slane %v3790_v40, %v3721_v8  ;;  %1957 = vmatprep.mubr.f32.mxu1 %v3562_v2 }
  0x69   : > { %v1634_v27 = vsel %vm1628_vm6, %v1617_v30, %v813_v32  ;;  %v1746_v43 = vsel %vm1628_vm6, %v1730_v34, %v1469_v44  ;;  %v1313_v35 = vrot.slane %v3793_v41, %v3721_v8  ;;  %v1395_v28 = vrot.slane %v3775_v33, %v3721_v8  ;;  %3272 = vmatmul.mubr.msk.f32.gmra.mrb[4].mxu0 %vm1785_vm7, %v4031_v23  ;;  %v4072_v44 = vld [vmem:[%s4839_s1 + $0x18] sm:$0xff] }
  0x6a   : > { %v3325_v45 = vpack.c.bf16 %v1746_v43, %v1634_v27  ;;  %v1477_v46 = vrot.slane %v3796_v42, %v3721_v8  ;;  %v1534_v47 = vsel %vm1526_vm0, 1.0, %v329_v52  ;;  %v1652_v36 = vsel %vm1526_vm0, %v903_v61, %v985_v26  ;;  %1880 = vmatprep.mubr.f32.mxu0 %v3562_v2 }
  0x6b   : > { %v1551_v32 = vsel %vm1543_vm1, %v1534_v47, %v411_v58  ;;  %v1668_v48 = vsel %vm1543_vm1, %v1652_v36, %v1067_v29  ;;  %v317_v50 = vrot.slane %v3731_v12, %v3723_v9  ;;  %v399_v49 = vrot.slane %v3734_v13, %v3723_v9  ;;  %3275 = vmatmul.mubr.msk.f32.gmra.mrb[2].mxu1 %vm1785_vm7, %v3999_v51 }
  0x6c   : > { %3326 = vmatprep.subr.bf16.mxu0 %v3325_v45  ;;  %v1568_v54 = vsel %vm1560_vm2, %v1551_v32, %v493_v62  ;;  %v1684_v55 = vsel %vm1560_vm2, %v1668_v48, %v1149_v31  ;;  %v481_v52 = vrot.slane %v3728_v11, %v3723_v9  ;;  %v563_v58 = vrot.slane %v3746_v17, %v3723_v9 }
  0x6d   : > { %v1585_v57 = vsel %vm1577_vm3, %v1568_v54, %v575_v53  ;;  %v1700_v59 = vsel %vm1577_vm3, %v1684_v55, %v1231_v37  ;;  %v645_v63 = vrot.slane %v3750_v18, %v3723_v9  ;;  %v727_v60 = vrot.slane %v3742_v16, %v3723_v9  ;;  %1963 = vmatprep.mubr.f32.mxu1 %v3562_v2 }
  0x6e   : > { %v1602_v62 = vsel %vm1594_vm4, %v1585_v57, %v657_v1  ;;  %v1716_v14 = vsel %vm1594_vm4, %v1700_v59, %v1313_v35  ;;  %v809_v15 = vrot.slane %v3754_v19, %v3723_v9  ;;  %v891_v53 = vrot.slane %v3760_v22, %v3723_v9  ;;  %3273 = vmatmul.mubr.msk.f32.gmra.mrb[6].mxu0 %vm1785_vm7, %v4072_v44  ;;  %v4157_v57 = vld [vmem:[%s3703_s25 + $0x20] ss:$4 sm:$0xff]  ;;  %v4160_v59 = vld [vmem:[%s3703_s25 + $0x21] ss:$4 sm:$0xff] }
  0x6f   : > { %v1619_v61 = vsel %vm1611_vm5, %v1602_v62, %v739_v56  ;;  %v1732_v0 = vsel %vm1611_vm5, %v1716_v14, %v1395_v28  ;;  %v973_v25 = vrot.slane %v3784_v38, %v3723_v9  ;;  %v1055_v1 = vrot.slane %v3764_v24, %v3723_v9  ;;  %3276 = vmatmul.mubr.msk.f32.gmra.mrb[4].mxu1 %vm1785_vm7, %v4031_v23  ;;  %v4169_v62 = vld [vmem:[%s3703_s25 + $0x22] ss:$4 sm:$0xff]  ;;  %s3497_s25 = sshll.u32 %s3564_s22, 4  ;;  %s3498_s25 = int_to_ptr.vmem [resolvable:$false] %s3497_s25 }
  0x70   : > { %v1636_v26 = vsel %vm1628_vm6, %v1619_v61, %v821_v20  ;;  %v1748_v29 = vsel %vm1628_vm6, %v1732_v0, %v1477_v46  ;;  %v1137_v30 = vrot.slane %v3787_v39, %v3723_v9  ;;  %v1219_v56 = vrot.slane %v3790_v40, %v3723_v9  ;;  %1969 = vmatprep.mubr.f32.mxu1 %v3562_v2  ;;  %s3499_s29 = scalar_lea.vmem %s3498_s25, 4096  ;;  %p3500_p4 = scmp.lt.s32.totalorder %s4795_s7, %s3498_s25 }
  0x71   : > { %v3329_v34 = vpack.c.bf16 %v1748_v29, %v1636_v26  ;;  %v1301_v31 = vrot.slane %v3793_v41, %v3723_v9  ;;  %v1383_v37 = vrot.slane %v3775_v33, %v3723_v9  ;;  %v1465_v20 = vrot.slane %v3796_v42, %v3723_v9  ;;  %2040 = vmatprep.mubr.f32.mxu0 %v3562_v2  ;;  %p3501_p9 = scmp.lt.s32.totalorder %s3499_s29, %s3493_s23 }
  0x72   : > { %v1531_v27 = vsel %vm1526_vm0, 1.0, %v317_v50  ;;  %v1649_v43 = vsel %vm1526_vm0, %v891_v53, %v973_v25  ;;  %v325_v35 = vrot.slane %v3731_v12, %v3725_v10  ;;  %v407_v28 = vrot.slane %v3734_v13, %v3725_v10 }
  0x73   : > { %3330 = vmatprep.subr.bf16.mxu1 %v3329_v34  ;;  %v1548_v45 = vsel %vm1543_vm1, %v1531_v27, %v399_v49  ;;  %v1665_v46 = vsel %vm1543_vm1, %v1649_v43, %v1055_v1  ;;  %v489_v47 = vrot.slane %v3728_v11, %v3725_v10  ;;  %v571_v36 = vrot.slane %v3746_v17, %v3725_v10  ;;  %p3502_p1 = por %p3501_p9, %p3500_p4 }
  0x74   : > { %v1565_v32 = vsel %vm1560_vm2, %v1548_v45, %v481_v52  ;;  %v1681_v48 = vsel %vm1560_vm2, %v1665_v46, %v1137_v30  ;;  %v653_v12 = vrot.slane %v3750_v18, %v3725_v10  ;;  %v735_v13 = vrot.slane %v3742_v16, %v3725_v10  ;;  %3277 = vmatmul.mubr.msk.f32.gmra.mrb[6].mxu1 %vm1785_vm7, %v4072_v44 }
  0x75   : > { %v1582_v11 = vsel %vm1577_vm3, %v1565_v32, %v563_v58  ;;  %v1697_v50 = vsel %vm1577_vm3, %v1681_v48, %v1219_v56  ;;  %v817_v17 = vrot.slane %v3754_v19, %v3725_v10  ;;  %v899_v49 = vrot.slane %v3760_v22, %v3725_v10  ;;  %2129 = vmatprep.mubr.f32.mxu1 %v3562_v2  ;;  %p3503_p3 = pnand %p3502_p1, %p3496_p12 }
  0x76   : > { %v1599_v18 = vsel %vm1594_vm4, %v1582_v11, %v645_v63  ;;  %v1713_v16 = vsel %vm1594_vm4, %v1697_v50, %v1301_v31  ;;  %v981_v54 = vrot.slane %v3784_v38, %v3725_v10  ;;  %v1063_v55 = vrot.slane %v3764_v24, %v3725_v10 }
  0x77   : > { %v1616_v52 = vsel %vm1611_vm5, %v1599_v18, %v727_v60  ;;  %v1729_v19 = vsel %vm1611_vm5, %v1713_v16, %v1383_v37  ;;  %v1145_v22 = vrot.slane %v3787_v39, %v3725_v10  ;;  %v1227_v58 = vrot.slane %v3790_v40, %v3725_v10 }
  0x78   : > { %v1633_v63 = vsel %vm1628_vm6, %v1616_v52, %v809_v15  ;;  %v1745_v38 = vsel %vm1628_vm6, %v1729_v19, %v1465_v20  ;;  %v1309_v24 = vrot.slane %v3793_v41, %v3725_v10  ;;  %v1391_v60 = vrot.slane %v3775_v33, %v3725_v10 }
  0x79   : > { %v3327_v39 = vpack.c.bf16 %v1745_v38, %v1633_v63  ;;  %v1473_v40 = vrot.slane %v3796_v42, %v3725_v10  ;;  %v1533_v14 = vsel %vm1526_vm0, 1.0, %v325_v35  ;;  %v1651_v53 = vsel %vm1526_vm0, %v899_v49, %v981_v54 }
  0x7a   : > { %v1550_v15 = vsel %vm1543_vm1, %v1533_v14, %v407_v28  ;;  %v1667_v61 = vsel %vm1543_vm1, %v1651_v53, %v1063_v55  ;;  %v255_v41 = vmul.f32 %v4157_v57, %v4157_v57  ;;  %v257_v33 = vmul.f32 %v4160_v59, %v4160_v59 }
  0x7b   : > { %3328 = vmatpush1.bf16.msra.mxu0 %v3327_v39  ;;  %v1567_v0 = vsel %vm1560_vm2, %v1550_v15, %v489_v47  ;;  %v1683_v25 = vsel %vm1560_vm2, %v1667_v61, %v1145_v22  ;;  %v4185_v42 = vmul.f32 %v4169_v62, %v4169_v62  ;;  %v4189_v1 = vmul.f32 %v4160_v59, %v4157_v57 }
  0x7c   : > { %v1584_v26 = vsel %vm1577_vm3, %v1567_v0, %v571_v36  ;;  %v1699_v29 = vsel %vm1577_vm3, %v1683_v25, %v1227_v58  ;;  %v269_v34 = vmul.f32 3.0, %v255_v41  ;;  %v4199_v20 = vsub.f32 %v255_v41, %v257_v33 }
  0x7d   : > { %v1601_v30 = vsel %vm1594_vm4, %v1584_v26, %v653_v12  ;;  %v1715_v56 = vsel %vm1594_vm4, %v1699_v29, %v1309_v24  ;;  %v277_v27 = vmul.f32 5.0, %v4185_v42  ;;  %v4206_v45 = vmul.f32 %v4169_v62, %v4189_v1 }
  0x7e   : > { %v1618_v31 = vsel %vm1611_vm5, %v1601_v30, %v735_v13  ;;  %v1731_v37 = vsel %vm1611_vm5, %v1715_v56, %v1391_v60  ;;  %3278 = vmatmul.mubr.msk.f32.vlgmr.msra.gmra.mrb[8].mxu0 %vm1785_vm7, %v3957_v21  ;;  %v271_v28 = vsub.f32 %v269_v34, %v257_v33  ;;  %v291_v32 = vmul.f32 3.0, %v257_v33 }
  0x7f   : > { %v1635_v43 = vsel %vm1628_vm6, %v1618_v31, %v817_v17  ;;  %v1747_v35 = vsel %vm1628_vm6, %v1731_v37, %v1473_v40  ;;  %2046 = vmatprep.mubr.f32.mxu0 %v3562_v2  ;;  %v279_v47 = vsub.f32 1.0, %v277_v27  ;;  %v3269_v36 = vadd.f32 -3.0, %v277_v27 }
  0x80   : > { %v3331_v46 = vpack.c.bf16 %v1747_v35, %v1635_v43  ;;  %v4211_v48 = vmul.f32 %v4169_v62, %v4160_v59  ;;  %v4215_v12 = vmul.f32 %v4169_v62, %v4157_v57  ;;  %v4218_v13 = vmul.f32 %v4160_v59, %v271_v28 }
  0x81   : > { %v337_v11 = vrot.slane %v4160_v59, %v3711_v3  ;;  %v4223_v50 = vmul.f32 %v4160_v59, %v279_v47  ;;  %v4226_v17 = vmul.f32 %v3269_v36, %v4169_v62  ;;  %v4229_v49 = vmul.f32 %v4157_v57, %v279_v47 }
  0x82   : > { %3332 = vmatpush1.bf16.msra.mxu1 %v3331_v46  ;;  %v293_v18 = vsub.f32 %v255_v41, %v291_v32  ;;  %v4233_v16 = vmul.f32 %v4169_v62, %v4199_v20  ;;  %v419_v54 = vrot.slane %v4169_v62, %v3711_v3  ;;  %v501_v55 = vrot.slane %v4157_v57, %v3711_v3 }
  0x83   : > { %v583_v52 = vrot.slane %v4189_v1, %v3711_v3  ;;  %3279 = vmatmul.mubr.msk.f32.gmra.mrb[10].mxu0 %vm1785_vm7, %v3999_v51  ;;  %v911_v22 = vrot.slane %v4199_v20, %v3711_v3  ;;  %v993_v58 = vrot.slane %v4218_v13, %v3711_v3  ;;  %v1075_v63 = vrot.slane %v4206_v45, %v3711_v3 }
  0x84   : > { %v4244_v19 = vmul.f32 %v4157_v57, %v293_v18  ;;  %2052 = vmatprep.mubr.f32.mxu0 %v3562_v2  ;;  %v665_v38 = vrot.slane %v4211_v48, %v3711_v3  ;;  %v747_v24 = vrot.slane %v4185_v42, %v3711_v3  ;;  %v1157_v60 = vrot.slane %v4223_v50, %v3711_v3 }
  0x85   : > { %3282 = vmatmul.mubr.msk.f32.vlgmr.msra.gmra.mrb[8].mxu1 %vm1785_vm7, %v3957_v21  ;;  %v1239_v39 = vrot.slane %v4226_v17, %v3711_v3  ;;  %v829_v40 = vrot.slane %v4215_v12, %v3711_v3  ;;  %v1321_v14 = vrot.slane %v4229_v49, %v3711_v3  ;;  %v1536_v53 = vsel %vm1526_vm0, 1.0, %v337_v11 }
  0x86   : > { %v1654_v15 = vsel %vm1526_vm0, %v911_v22, %v993_v58  ;;  %2135 = vmatprep.mubr.f32.mxu1 %v3562_v2  ;;  %v1403_v61 = vrot.slane %v4233_v16, %v3711_v3  ;;  %v1485_v41 = vrot.slane %v4244_v19, %v3711_v3  ;;  %v1553_v33 = vsel %vm1543_vm1, %v1536_v53, %v419_v54 }
  0x87   : > { %v1670_v0 = vsel %vm1543_vm1, %v1654_v15, %v1075_v63  ;;  %3280 = vmatmul.mubr.msk.f32.gmra.mrb[12].mxu0 %vm1785_vm7, %v4031_v23  ;;  %v1570_v25 = vsel %vm1560_vm2, %v1553_v33, %v501_v55  ;;  %v345_v29 = vrot.slane %v4160_v59, %v3713_v4  ;;  %v427_v30 = vrot.slane %v4169_v62, %v3713_v4 }
  0x88   : > { %v1686_v26 = vsel %vm1560_vm2, %v1670_v0, %v1157_v60  ;;  %2058 = vmatprep.mubr.f32.mxu0 %v3562_v2  ;;  %v1587_v3 = vsel %vm1577_vm3, %v1570_v25, %v583_v52  ;;  %v509_v34 = vrot.slane %v4157_v57, %v3713_v4  ;;  %v591_v31 = vrot.slane %v4189_v1, %v3713_v4 }
  0x89   : > { %v1702_v56 = vsel %vm1577_vm3, %v1686_v26, %v1239_v39  ;;  %3283 = vmatmul.mubr.msk.f32.gmra.mrb[10].mxu1 %vm1785_vm7, %v3999_v51  ;;  %v1604_v37 = vsel %vm1594_vm4, %v1587_v3, %v665_v38  ;;  %v919_v43 = vrot.slane %v4199_v20, %v3713_v4  ;;  %v1001_v35 = vrot.slane %v4218_v13, %v3713_v4 }
  0x8a   : > { %v1718_v27 = vsel %vm1594_vm4, %v1702_v56, %v1321_v14  ;;  %2141 = vmatprep.mubr.f32.mxu1 %v3562_v2  ;;  %v1621_v28 = vsel %vm1611_vm5, %v1604_v37, %v747_v24  ;;  %v673_v47 = vrot.slane %v4211_v48, %v3713_v4  ;;  %v1083_v36 = vrot.slane %v4206_v45, %v3713_v4 }
  0x8b   : > { %v1734_v46 = vsel %vm1611_vm5, %v1718_v27, %v1403_v61  ;;  %3281 = vmatmul.mubr.msk.f32.gmra.mrb[14].mxu0 %vm1785_vm7, %v4072_v44  ;;  %v1638_v32 = vsel %vm1628_vm6, %v1621_v28, %v829_v40  ;;  %v755_v18 = vrot.slane %v4185_v42, %v3713_v4  ;;  %v1165_v54 = vrot.slane %v4223_v50, %v3713_v4 }
  0x8c   : > { %v1750_v11 = vsel %vm1628_vm6, %v1734_v46, %v1485_v41  ;;  %2218 = vmatprep.mubr.f32.mxu0 %v3562_v2  ;;  %v837_v52 = vrot.slane %v4215_v12, %v3713_v4  ;;  %v1247_v22 = vrot.slane %v4226_v17, %v3713_v4  ;;  %v1538_v58 = vsel %vm1526_vm0, 1.0, %v345_v29 }
  0x8d   : > { %v3333_v55 = vpack.c.bf16 %v1750_v11, %v1638_v32  ;;  %3284 = vmatmul.mubr.msk.f32.gmra.mrb[12].mxu1 %vm1785_vm7, %v4031_v23  ;;  %v1329_v63 = vrot.slane %v4229_v49, %v3713_v4  ;;  %v1411_v38 = vrot.slane %v4233_v16, %v3713_v4  ;;  %v1555_v24 = vsel %vm1543_vm1, %v1538_v58, %v427_v30 }
  0x8e   : > { %v1656_v60 = vsel %vm1526_vm0, %v919_v43, %v1001_v35  ;;  %2147 = vmatprep.mubr.f32.mxu1 %v3562_v2  ;;  %v1493_v39 = vrot.slane %v4244_v19, %v3713_v4  ;;  %v1572_v40 = vsel %vm1560_vm2, %v1555_v24, %v509_v34  ;;  %v333_v53 = vrot.slane %v4160_v59, %v3715_v5 }
  0x8f   : > { %3334 = vmatprep.subr.bf16.mxu0 %v3333_v55  ;;  %v1672_v14 = vsel %vm1543_vm1, %v1656_v60, %v1083_v36  ;;  %v1589_v15 = vsel %vm1577_vm3, %v1572_v40, %v591_v31  ;;  %v415_v41 = vrot.slane %v4169_v62, %v3715_v5  ;;  %v497_v33 = vrot.slane %v4157_v57, %v3715_v5 }
  0x90   : > { %v1688_v61 = vsel %vm1560_vm2, %v1672_v14, %v1165_v54  ;;  %v1606_v0 = vsel %vm1594_vm4, %v1589_v15, %v673_v47  ;;  %v579_v25 = vrot.slane %v4189_v1, %v3715_v5  ;;  %v907_v26 = vrot.slane %v4199_v20, %v3715_v5 }
  0x91   : > { %v1704_v4 = vsel %vm1577_vm3, %v1688_v61, %v1247_v22  ;;  %3285 = vmatmul.mubr.msk.f32.gmra.mrb[14].mxu1 %vm1785_vm7, %v4072_v44  ;;  %v1623_v29 = vsel %vm1611_vm5, %v1606_v0, %v755_v18  ;;  %v989_v3 = vrot.slane %v4218_v13, %v3715_v5  ;;  %v1071_v56 = vrot.slane %v4206_v45, %v3715_v5 }
  0x92   : > { %v1720_v30 = vsel %vm1594_vm4, %v1704_v4, %v1329_v63  ;;  %2307 = vmatprep.mubr.f32.mxu1 %v3562_v2  ;;  %v1640_v34 = vsel %vm1628_vm6, %v1623_v29, %v837_v52  ;;  %v661_v37 = vrot.slane %v4211_v48, %v3715_v5  ;;  %v1153_v27 = vrot.slane %v4223_v50, %v3715_v5 }
  0x93   : > { %v1736_v31 = vsel %vm1611_vm5, %v1720_v30, %v1411_v38  ;;  %v743_v35 = vrot.slane %v4185_v42, %v3715_v5  ;;  %v825_v28 = vrot.slane %v4215_v12, %v3715_v5  ;;  %v1235_v46 = vrot.slane %v4226_v17, %v3715_v5 }
  0x94   : > { %v1752_v43 = vsel %vm1628_vm6, %v1736_v31, %v1493_v39  ;;  %v1317_v36 = vrot.slane %v4229_v49, %v3715_v5  ;;  %v1535_v32 = vsel %vm1526_vm0, 1.0, %v333_v53  ;;  %v1653_v11 = vsel %vm1526_vm0, %v907_v26, %v989_v3 }
  0x95   : > { %v3337_v47 = vpack.c.bf16 %v1752_v43, %v1640_v34  ;;  %v1399_v18 = vrot.slane %v4233_v16, %v3715_v5  ;;  %v1481_v54 = vrot.slane %v4244_v19, %v3715_v5  ;;  %v1552_v55 = vsel %vm1543_vm1, %v1535_v32, %v415_v41 }
  0x96   : > { %v1669_v52 = vsel %vm1543_vm1, %v1653_v11, %v1071_v56  ;;  %v1569_v22 = vsel %vm1560_vm2, %v1552_v55, %v497_v33  ;;  %v341_v63 = vrot.slane %v4160_v59, %v3717_v6  ;;  %v423_v38 = vrot.slane %v4169_v62, %v3717_v6 }
  0x97   : > { %3338 = vmatprep.subr.bf16.mxu1 %v3337_v47  ;;  %v1685_v58 = vsel %vm1560_vm2, %v1669_v52, %v1153_v27  ;;  %v1586_v24 = vsel %vm1577_vm3, %v1569_v22, %v579_v25  ;;  %v505_v5 = vrot.slane %v4157_v57, %v3717_v6  ;;  %v587_v39 = vrot.slane %v4189_v1, %v3717_v6 }
  0x98   : > { %v1701_v60 = vsel %vm1577_vm3, %v1685_v58, %v1235_v46  ;;  %v1603_v40 = vsel %vm1594_vm4, %v1586_v24, %v661_v37  ;;  %v915_v53 = vrot.slane %v4199_v20, %v3717_v6  ;;  %v997_v15 = vrot.slane %v4218_v13, %v3717_v6 }
  0x99   : > { %v1717_v14 = vsel %vm1594_vm4, %v1701_v60, %v1317_v36  ;;  %v1620_v61 = vsel %vm1611_vm5, %v1603_v40, %v743_v35  ;;  %v669_v33 = vrot.slane %v4211_v48, %v3717_v6  ;;  %v1079_v0 = vrot.slane %v4206_v45, %v3717_v6 }
  0x9a   : > { %v1733_v41 = vsel %vm1611_vm5, %v1717_v14, %v1399_v18  ;;  %v1637_v4 = vsel %vm1628_vm6, %v1620_v61, %v825_v28  ;;  %v751_v26 = vrot.slane %v4185_v42, %v3717_v6  ;;  %v1161_v29 = vrot.slane %v4223_v50, %v3717_v6 }
  0x9b   : > { %v1749_v25 = vsel %vm1628_vm6, %v1733_v41, %v1481_v54  ;;  %v833_v3 = vrot.slane %v4215_v12, %v3717_v6  ;;  %v1243_v56 = vrot.slane %v4226_v17, %v3717_v6  ;;  %v1537_v34 = vsel %vm1526_vm0, 1.0, %v341_v63 }
  0x9c   : > { %v3335_v30 = vpack.c.bf16 %v1749_v25, %v1637_v4  ;;  %v1325_v31 = vrot.slane %v4229_v49, %v3717_v6  ;;  %v1407_v37 = vrot.slane %v4233_v16, %v3717_v6  ;;  %v1554_v27 = vsel %vm1543_vm1, %v1537_v34, %v423_v38 }
  0x9d   : > { %v1655_v43 = vsel %vm1526_vm0, %v915_v53, %v997_v15  ;;  %v1489_v35 = vrot.slane %v4244_v19, %v3717_v6  ;;  %v1571_v28 = vsel %vm1560_vm2, %v1554_v27, %v505_v5  ;;  %v353_v47 = vrot.slane %v4160_v59, %v3719_v7 }
  0x9e   : > { %3336 = vmatpush1.bf16.msra.mxu0 %v3335_v30  ;;  %v1671_v46 = vsel %vm1543_vm1, %v1655_v43, %v1079_v0  ;;  %v1588_v36 = vsel %vm1577_vm3, %v1571_v28, %v587_v39  ;;  %v435_v11 = vrot.slane %v4169_v62, %v3719_v7  ;;  %v517_v18 = vrot.slane %v4157_v57, %v3719_v7 }
  0x9f   : > { %v1687_v32 = vsel %vm1560_vm2, %v1671_v46, %v1161_v29  ;;  %v1605_v54 = vsel %vm1594_vm4, %v1588_v36, %v669_v33  ;;  %v599_v55 = vrot.slane %v4189_v1, %v3719_v7  ;;  %v927_v52 = vrot.slane %v4199_v20, %v3719_v7 }
  0xa0   : > { %v1703_v6 = vsel %vm1577_vm3, %v1687_v32, %v1243_v56  ;;  %v1622_v22 = vsel %vm1611_vm5, %v1605_v54, %v751_v26  ;;  %v1009_v63 = vrot.slane %v4218_v13, %v3719_v7  ;;  %v1091_v38 = vrot.slane %v4206_v45, %v3719_v7 }
  0xa1   : > { %v1719_v58 = vsel %vm1594_vm4, %v1703_v6, %v1325_v31  ;;  %3286 = vmatmul.mubr.msk.f32.vlgmr.msra.gmra.mrb[16].mxu0 %vm1785_vm7, %v3957_v21  ;;  %v1639_v24 = vsel %vm1628_vm6, %v1622_v22, %v833_v3  ;;  %v681_v5 = vrot.slane %v4211_v48, %v3719_v7  ;;  %v1173_v39 = vrot.slane %v4223_v50, %v3719_v7 }
  0xa2   : > { %v1735_v60 = vsel %vm1611_vm5, %v1719_v58, %v1407_v37  ;;  %2224 = vmatprep.mubr.f32.mxu0 %v3562_v2  ;;  %v763_v14 = vrot.slane %v4185_v42, %v3719_v7  ;;  %v845_v53 = vrot.slane %v4215_v12, %v3719_v7  ;;  %v1255_v15 = vrot.slane %v4226_v17, %v3719_v7 }
  0xa3   : > { %v1751_v40 = vsel %vm1628_vm6, %v1735_v60, %v1489_v35  ;;  %v1337_v41 = vrot.slane %v4229_v49, %v3719_v7  ;;  %v1540_v33 = vsel %vm1526_vm0, 1.0, %v353_v47  ;;  %v1658_v0 = vsel %vm1526_vm0, %v927_v52, %v1009_v63 }
  0xa4   : > { %v3339_v61 = vpack.c.bf16 %v1751_v40, %v1639_v24  ;;  %v1419_v4 = vrot.slane %v4233_v16, %v3719_v7  ;;  %v1501_v25 = vrot.slane %v4244_v19, %v3719_v7  ;;  %v1557_v26 = vsel %vm1543_vm1, %v1540_v33, %v435_v11 }
  0xa5   : > { %v1674_v29 = vsel %vm1543_vm1, %v1658_v0, %v1091_v38  ;;  %3287 = vmatmul.mubr.msk.f32.gmra.mrb[18].mxu0 %vm1785_vm7, %v3999_v51  ;;  %v1574_v30 = vsel %vm1560_vm2, %v1557_v26, %v517_v18  ;;  %v361_v56 = vrot.slane %v4160_v59, %v3721_v8  ;;  %v443_v34 = vrot.slane %v4169_v62, %v3721_v8 }
  0xa6   : > { %3340 = vmatpush1.bf16.msra.mxu1 %v3339_v61  ;;  %v1690_v3 = vsel %vm1560_vm2, %v1674_v29, %v1173_v39  ;;  %v1591_v7 = vsel %vm1577_vm3, %v1574_v30, %v599_v55  ;;  %v525_v37 = vrot.slane %v4157_v57, %v3721_v8  ;;  %v607_v27 = vrot.slane %v4189_v1, %v3721_v8 }
  0xa7   : > { %v1706_v31 = vsel %vm1577_vm3, %v1690_v3, %v1255_v15  ;;  %2230 = vmatprep.mubr.f32.mxu0 %v3562_v2  ;;  %v1608_v43 = vsel %vm1594_vm4, %v1591_v7, %v681_v5  ;;  %v935_v28 = vrot.slane %v4199_v20, %v3721_v8  ;;  %v1017_v46 = vrot.slane %v4218_v13, %v3721_v8 }
  0xa8   : > { %v1722_v35 = vsel %vm1594_vm4, %v1706_v31, %v1337_v41  ;;  %v1625_v47 = vsel %vm1611_vm5, %v1608_v43, %v763_v14  ;;  %v689_v32 = vrot.slane %v4211_v48, %v3721_v8  ;;  %v1099_v11 = vrot.slane %v4206_v45, %v3721_v8 }
  0xa9   : > { %3290 = vmatmul.mubr.msk.f32.vlgmr.msra.gmra.mrb[16].mxu1 %vm1785_vm7, %v3957_v21  ;;  %v1738_v36 = vsel %vm1611_vm5, %v1722_v35, %v1419_v4  ;;  %v1642_v18 = vsel %vm1628_vm6, %v1625_v47, %v845_v53  ;;  %v771_v6 = vrot.slane %v4185_v42, %v3721_v8  ;;  %v1181_v55 = vrot.slane %v4223_v50, %v3721_v8 }
  0xaa   : > { %v1754_v54 = vsel %vm1628_vm6, %v1738_v36, %v1501_v25  ;;  %2313 = vmatprep.mubr.f32.mxu1 %v3562_v2  ;;  %v853_v22 = vrot.slane %v4215_v12, %v3721_v8  ;;  %v1263_v58 = vrot.slane %v4226_v17, %v3721_v8  ;;  %v1542_v63 = vsel %vm1526_vm0, 1.0, %v361_v56  ;;  %3288 = vmatmul.mubr.msk.f32.gmra.mrb[20].mxu0 %vm1785_vm7, %v4031_v23 }
  0xab   : > { %v3341_v52 = vpack.c.bf16 %v1754_v54, %v1642_v18  ;;  %v1345_v38 = vrot.slane %v4229_v49, %v3721_v8  ;;  %v1427_v24 = vrot.slane %v4233_v16, %v3721_v8  ;;  %v1559_v60 = vsel %vm1543_vm1, %v1542_v63, %v443_v34  ;;  %2236 = vmatprep.mubr.f32.mxu0 %v3562_v2 }
  0xac   : > { %v1660_v5 = vsel %vm1526_vm0, %v935_v28, %v1017_v46  ;;  %v1509_v39 = vrot.slane %v4244_v19, %v3721_v8  ;;  %v1576_v40 = vsel %vm1560_vm2, %v1559_v60, %v525_v37  ;;  %v349_v53 = vrot.slane %v4160_v59, %v3723_v9 }
  0xad   : > { %3342 = vmatprep.subr.bf16.mxu0 %v3341_v52  ;;  %v1676_v14 = vsel %vm1543_vm1, %v1660_v5, %v1099_v11  ;;  %v1593_v15 = vsel %vm1577_vm3, %v1576_v40, %v607_v27  ;;  %v431_v41 = vrot.slane %v4169_v62, %v3723_v9  ;;  %v513_v33 = vrot.slane %v4157_v57, %v3723_v9 }
  0xae   : > { %v1692_v61 = vsel %vm1560_vm2, %v1676_v14, %v1181_v55  ;;  %3291 = vmatmul.mubr.msk.f32.gmra.mrb[18].mxu1 %vm1785_vm7, %v3999_v51  ;;  %v1610_v8 = vsel %vm1594_vm4, %v1593_v15, %v689_v32  ;;  %v595_v4 = vrot.slane %v4189_v1, %v3723_v9  ;;  %v923_v25 = vrot.slane %v4199_v20, %v3723_v9 }
  0xaf   : > { %v1708_v0 = vsel %vm1577_vm3, %v1692_v61, %v1263_v58  ;;  %2319 = vmatprep.mubr.f32.mxu1 %v3562_v2  ;;  %v1627_v26 = vsel %vm1611_vm5, %v1610_v8, %v771_v6  ;;  %v1005_v30 = vrot.slane %v4218_v13, %v3723_v9  ;;  %v1087_v3 = vrot.slane %v4206_v45, %v3723_v9 }
  0xb0   : > { %v1724_v29 = vsel %vm1594_vm4, %v1708_v0, %v1345_v38  ;;  %3289 = vmatmul.mubr.msk.f32.gmra.mrb[22].mxu0 %vm1785_vm7, %v4072_v44  ;;  %v1644_v56 = vsel %vm1628_vm6, %v1627_v26, %v853_v22  ;;  %v677_v7 = vrot.slane %v4211_v48, %v3723_v9  ;;  %v1169_v31 = vrot.slane %v4223_v50, %v3723_v9 }
  0xb1   : > { %v1740_v34 = vsel %vm1611_vm5, %v1724_v29, %v1427_v24  ;;  %2396 = vmatprep.mubr.f32.mxu0 %v3562_v2  ;;  %v759_v27 = vrot.slane %v4185_v42, %v3723_v9  ;;  %v841_v43 = vrot.slane %v4215_v12, %v3723_v9  ;;  %v1251_v35 = vrot.slane %v4226_v17, %v3723_v9 }
  0xb2   : > { %v1756_v37 = vsel %vm1628_vm6, %v1740_v34, %v1509_v39  ;;  %3292 = vmatmul.mubr.msk.f32.gmra.mrb[20].mxu1 %vm1785_vm7, %v4031_v23  ;;  %v1333_v46 = vrot.slane %v4229_v49, %v3723_v9  ;;  %v1539_v47 = vsel %vm1526_vm0, 1.0, %v349_v53  ;;  %v1657_v36 = vsel %vm1526_vm0, %v923_v25, %v1005_v30 }
  0xb3   : > { %v3345_v28 = vpack.c.bf16 %v1756_v37, %v1644_v56  ;;  %2325 = vmatprep.mubr.f32.mxu1 %v3562_v2  ;;  %v1415_v32 = vrot.slane %v4233_v16, %v3723_v9  ;;  %v1497_v11 = vrot.slane %v4244_v19, %v3723_v9  ;;  %v1556_v18 = vsel %vm1543_vm1, %v1539_v47, %v431_v41 }
  0xb4   : > { %v1673_v54 = vsel %vm1543_vm1, %v1657_v36, %v1087_v3  ;;  %v1573_v6 = vsel %vm1560_vm2, %v1556_v18, %v513_v33  ;;  %v357_v52 = vrot.slane %v4160_v59, %v3725_v10  ;;  %v439_v22 = vrot.slane %v4169_v62, %v3725_v10 }
  0xb5   : > { %3346 = vmatprep.subr.bf16.mxu1 %v3345_v28  ;;  %v1689_v55 = vsel %vm1560_vm2, %v1673_v54, %v1169_v31  ;;  %v1590_v58 = vsel %vm1577_vm3, %v1573_v6, %v595_v4  ;;  %v521_v9 = vrot.slane %v4157_v57, %v3725_v10  ;;  %v603_v38 = vrot.slane %v4189_v1, %v3725_v10  ;;  %v2575_v31 = vld [vmem:[%s4842_s4] sm:$0xff] }
  0xb6   : > { %v1705_v63 = vsel %vm1577_vm3, %v1689_v55, %v1251_v35  ;;  %3293 = vmatmul.mubr.msk.f32.gmra.mrb[22].mxu1 %vm1785_vm7, %v4072_v44  ;;  %v1607_v24 = vsel %vm1594_vm4, %v1590_v58, %v677_v7  ;;  %v931_v62 = vrot.slane %v4199_v20, %v3725_v10  ;;  %v1013_v60 = vrot.slane %v4218_v13, %v3725_v10 }
  0xb7   : > { %v1721_v59 = vsel %vm1594_vm4, %v1705_v63, %v1333_v46  ;;  %2485 = vmatprep.mubr.f32.mxu1 %v3562_v2  ;;  %v1624_v57 = vsel %vm1611_vm5, %v1607_v24, %v759_v27  ;;  %v685_v1 = vrot.slane %v4211_v48, %v3725_v10  ;;  %v1095_v39 = vrot.slane %v4206_v45, %v3725_v10  ;;  %v1761_v45 = vld [vmem:[%s4840_s2] sm:$0xff] }
  0xb8   : > { %v1737_v5 = vsel %vm1611_vm5, %v1721_v59, %v1415_v32  ;;  %v1641_v40 = vsel %vm1628_vm6, %v1624_v57, %v841_v43  ;;  %v767_v20 = vrot.slane %v4185_v42, %v3725_v10  ;;  %v1177_v13 = vrot.slane %v4223_v50, %v3725_v10 }
  0xb9   : > { %v1753_v14 = vsel %vm1628_vm6, %v1737_v5, %v1497_v11  ;;  %v849_v15 = vrot.slane %v4215_v12, %v3725_v10  ;;  %v1259_v48 = vrot.slane %v4226_v17, %v3725_v10  ;;  %v1541_v61 = vsel %vm1526_vm0, 1.0, %v357_v52  ;;  %v1763_v12 = vld [vmem:[%s4840_s2 + $0x10] sm:$0xff] }
  0xba   : > { %v3343_v53 = vpack.c.bf16 %v1753_v14, %v1641_v40  ;;  %v1341_v41 = vrot.slane %v4229_v49, %v3725_v10  ;;  %v1558_v42 = vsel %vm1543_vm1, %v1541_v61, %v439_v22  ;;  %v1659_v50 = vsel %vm1526_vm0, %v931_v62, %v1013_v60 }
  0xbb   : > { %v1423_v17 = vrot.slane %v4233_v16, %v3725_v10  ;;  %v1575_v33 = vsel %vm1560_vm2, %v1558_v42, %v521_v9  ;;  %v1675_v8 = vsel %vm1543_vm1, %v1659_v50, %v1095_v39  ;;  %v3563_v0 = vmov 0   ;;  %v1762_v16 = vld [vmem:[%s4840_s2 + $0x8] sm:$0xff] }
  0xbc   : > { %3344 = vmatpush1.bf16.msra.mxu0 %v3343_v53  ;;  %3461 = vset.pattern.permute.xlu0 %v3563_v0  ;;  %v1505_v49 = vrot.slane %v4244_v19, %v3725_v10  ;;  %v1592_v4 = vsel %vm1577_vm3, %v1575_v33, %v603_v38  ;;  %v1691_v25 = vsel %vm1560_vm2, %v1675_v8, %v1177_v13  ;;  %v1764_v10 = vld [vmem:[%s4840_s2 + $0x18] sm:$0xff]  ;;  %vm2581_vm8 = vcmask 261120  }
  0xbd   : > { %1767 = vperm.xlu0 %3461, %v1761_v45   ;;  %3462 = vset.pattern.permute.xlu1 %v3563_v0  ;;  %v1609_v26 = vsel %vm1594_vm4, %v1592_v4, %v685_v1  ;;  %v1707_v29 = vsel %vm1577_vm3, %v1691_v25, %v1259_v48 }
  0xbe   : > { %1777 = vperm.xlu1 %3462, %v1763_v12   ;;  %v1626_v30 = vsel %vm1611_vm5, %v1609_v26, %v767_v20  ;;  %v1723_v3 = vsel %vm1594_vm4, %v1707_v29, %v1341_v41 }
  0xbf   : > { %3294 = vmatmul.mubr.msk.f32.vlgmr.msra.gmra.mrb[24].mxu0 %vm1785_vm7, %v3957_v21  ;;  %v1643_v19 = vsel %vm1628_vm6, %v1626_v30, %v849_v15  ;;  %v1739_v56 = vsel %vm1611_vm5, %v1723_v3, %v1423_v17 }
  0xc0   : > { %2402 = vmatprep.mubr.f32.mxu0 %v3562_v2  ;;  %v1755_v34 = vsel %vm1628_vm6, %v1739_v56, %v1505_v49  ;;  %v4699_v56 = vld [vmem:[%s4841_s3] sm:$0xff] }
  0xc1   : > { %1772 = vperm.xlu0 %3461, %v1762_v16   ;;  %v3347_v7 = vpack.c.bf16 %v1755_v34, %v1643_v19 }
  0xc2   : > { %1782 = vperm.xlu1 %3462, %v1764_v10  }
  0xc3   : > { %3295 = vmatmul.mubr.msk.f32.gmra.mrb[26].mxu0 %vm1785_vm7, %v3999_v51  ;;  %3348 = vmatpush1.bf16.msra.mxu1 %v3347_v7 }
  0xc4   : > { %2408 = vmatprep.mubr.f32.mxu0 %v3562_v2 }
  0xc5   : > { %2578 = vperm.xlu0 %3461, %v2575_v31  }
  0xc6   : > { %3298 = vmatmul.mubr.msk.f32.vlgmr.msra.gmra.mrb[24].mxu1 %vm1785_vm7, %v3957_v21 }
  0xc7   : > { %3296 = vmatmul.mubr.msk.f32.gmra.mrb[28].mxu0 %vm1785_vm7, %v4031_v23  ;;  %2491 = vmatprep.mubr.f32.mxu1 %v3562_v2 }
  0xc8   : > { %2414 = vmatprep.mubr.f32.mxu0 %v3562_v2 }
  0xca   : > { %3299 = vmatmul.mubr.msk.f32.gmra.mrb[26].mxu1 %vm1785_vm7, %v3999_v51 }
  0xcb   : > { %3297 = vmatmul.mubr.msk.f32.gmra.mrb[30].mxu0 %vm1785_vm7, %v4072_v44  ;;  %2497 = vmatprep.mubr.f32.mxu1 %v3562_v2 }
  0xcc   : > { %2649 = vmatprep.mubr.f32.mxu0 %v3562_v2 }
  0xce   : > { %3300 = vmatmul.mubr.msk.f32.gmra.mrb[28].mxu1 %vm1785_vm7, %v4031_v23 }
  0xcf   : > { %2503 = vmatprep.mubr.f32.mxu1 %v3562_v2 }
  0xd2   : > { %3301 = vmatmul.mubr.msk.f32.gmra.mrb[30].mxu1 %vm1785_vm7, %v4072_v44 }
  0xd3   : > { %2720 = vmatprep.mubr.f32.mxu1 %v3562_v2 }
 0x133   : > { %v1864_v21 = vpop.f32.mrb[0].mxu0 }
 0x134   : > { %v1866_v37 = vpop.f32.mrb[1].mxu0 }
 0x138   : > { %v1870_v51 = vpop.f32.mrb[2].mxu0 }
 0x139   : > { %v1872_v27 = vpop.f32.mrb[3].mxu0 }
 0x13a   : > { %v1953_v43 = vpop.f32.mrb[0].mxu1 }
 0x13b   : > { %v1955_v35 = vpop.f32.mrb[1].mxu1 }
 0x13c   : > { %v4672_v28 = vpop.permute.xlu0 %1767  ;;  %v1876_v46 = vpop.f32.mrb[4].mxu0 }
 0x13d   : > { %v1865_v47 = vadd.f32 %v1864_v21, %v4672_v28  ;;  %v4675_v36 = vpop.permute.xlu1 %1777  ;;  %v1878_v23 = vpop.f32.mrb[5].mxu0  ;;  %v1954_v32 = vadd.f32 %v1953_v43, %v4672_v28  ;;  %v1867_v44 = vadd.f32 %v1866_v37, %v4672_v28  ;;  %v1956_v11 = vadd.f32 %v1955_v35, %v4672_v28 }
 0x13e   : > { %v1959_v18 = vpop.f32.mrb[2].mxu1  ;;  %v1877_v52 = vadd.f32 %v1876_v46, %v4675_v36  ;;  %v1879_v22 = vadd.f32 %v1878_v23, %v4675_v36 }
 0x13f   : > { %v1961_v54 = vpop.f32.mrb[3].mxu1  ;;  %v2510_v6 = vmax.f32 %v1865_v47, 0.0  ;;  %v2512_v62 = vmax.f32 %v1954_v32, 0.0  ;;  %v2511_v60 = vmax.f32 %v1867_v44, 0.0  ;;  %v2513_v57 = vmax.f32 %v1956_v11, 0.0 }
 0x140   : > { %v4680_v55 = vpop.permute.xlu0 %1772  ;;  %v2542_v15 = vmax.f32 %v1877_v52, 0.0  ;;  %v2543_v17 = vmax.f32 %v1879_v22, 0.0 }
 0x141   : > { %v1871_v58 = vadd.f32 %v1870_v51, %v4680_v55  ;;  %v1960_v63 = vadd.f32 %v1959_v18, %v4680_v55  ;;  %v1873_v9 = vadd.f32 %v1872_v27, %v4680_v55  ;;  %v1962_v38 = vadd.f32 %v1961_v54, %v4680_v55  ;;  %v4688_v24 = vpop.permute.xlu1 %1782  ;;  %v1882_v59 = vpop.f32.mrb[6].mxu0 }
 0x142   : > { %v1965_v5 = vpop.f32.mrb[4].mxu1  ;;  %v1883_v1 = vadd.f32 %v1882_v59, %v4688_v24  ;;  %v1884_v39 = vpop.f32.mrb[7].mxu0 }
 0x143   : > { %v2526_v40 = vmax.f32 %v1871_v58, 0.0  ;;  %v2528_v14 = vmax.f32 %v1960_v63, 0.0  ;;  %v2527_v20 = vmax.f32 %v1873_v9, 0.0  ;;  %v2529_v13 = vmax.f32 %v1962_v38, 0.0  ;;  %v1967_v53 = vpop.f32.mrb[5].mxu1 }
 0x144   : > { %v2558_v48 = vmax.f32 %v1883_v1, 0.0  ;;  %v1885_v61 = vadd.f32 %v1884_v39, %v4688_v24  ;;  %v1966_v12 = vadd.f32 %v1965_v5, %v4675_v36  ;;  %v1968_v0 = vadd.f32 %v1967_v53, %v4675_v36 }
 0x145   : > { %v3351_v45 = vpack.c.bf16 %v2526_v40, %v2510_v6  ;;  %v3359_v41 = vpack.c.bf16 %v2528_v14, %v2512_v62  ;;  %v3349_v42 = vpack.c.bf16 %v2527_v20, %v2511_v60  ;;  %v3357_v50 = vpack.c.bf16 %v2529_v13, %v2513_v57 }
 0x146   : > { %v3355_v33 = vpack.c.bf16 %v2558_v48, %v2542_v15  ;;  %v2559_v8 = vmax.f32 %v1885_v61, 0.0  ;;  %v2544_v16 = vmax.f32 %v1966_v12, 0.0  ;;  %v2545_v3 = vmax.f32 %v1968_v0, 0.0 }
 0x147   : > { %v1971_v49 = vpop.f32.mrb[6].mxu1  ;;  %3350 = vmatprep.subr.bf16.mxu0 %v3349_v42  ;;  %3358 = vmatprep.subr.bf16.mxu1 %v3357_v50 }
 0x148   : > { %v1972_v4 = vadd.f32 %v1971_v49, %v4688_v24  ;;  %v3353_v25 = vpack.c.bf16 %v2559_v8, %v2543_v17  ;;  %v1973_v26 = vpop.f32.mrb[7].mxu1  ;;  %3352 = vmatpush1.bf16.msra.mxu0 %v3351_v45  ;;  %3360 = vmatpush1.bf16.msra.mxu1 %v3359_v41 }
 0x149   : > { %v1974_v29 = vadd.f32 %v1973_v26, %v4688_v24 }
 0x14a   : > { %v2560_v30 = vmax.f32 %v1972_v4, 0.0  ;;  %3354 = vmatprep.subr.bf16.mxu0 %v3353_v25 }
 0x14b   : > { %v2561_v10 = vmax.f32 %v1974_v29, 0.0 }
 0x14c   : > { %v3363_v19 = vpack.c.bf16 %v2560_v30, %v2544_v16  ;;  %3356 = vmatpush1.bf16.msra.mxu0 %v3355_v33 }
 0x14d   : > { %v3361_v34 = vpack.c.bf16 %v2561_v10, %v2545_v3 }
 0x14f   : > { %3362 = vmatprep.subr.bf16.mxu1 %v3361_v34  ;;  %3302 = vmatmul.mubr.msk.f32.vlgmr.msra.gmra.mrb[32].mxu0 %vm2581_vm8, %v4699_v56 }
 0x150   : > { %3364 = vmatpush1.bf16.msra.mxu1 %v3363_v19  ;;  %2791 = vmatprep.mubr.f32.mxu0 %v3562_v2 }
 0x151   : > { %v2042_v7 = vpop.f32.mrb[8].mxu0 }
 0x152   : > { %v2044_v31 = vpop.f32.mrb[9].mxu0  ;;  %v2043_v21 = vadd.f32 %v2042_v7, %v4672_v28 }
 0x153   : > { %3303 = vmatmul.mubr.msk.f32.vlgmr.msra.gmra.mrb[32].mxu1 %vm2581_vm8, %v4699_v56  ;;  %v2045_v37 = vadd.f32 %v2044_v31, %v4672_v28 }
 0x154   : > { %2862 = vmatprep.mubr.f32.mxu1 %v3562_v2  ;;  %v2514_v47 = vmax.f32 %v2043_v21, 0.0 }
 0x155   : > { %v2515_v44 = vmax.f32 %v2045_v37, 0.0 }
 0x156   : > { %v2048_v51 = vpop.f32.mrb[10].mxu0 }
 0x157   : > { %v2049_v27 = vadd.f32 %v2048_v51, %v4680_v55  ;;  %v2050_v43 = vpop.f32.mrb[11].mxu0 }
 0x158   : > { %v2131_v35 = vpop.f32.mrb[8].mxu1  ;;  %v2051_v46 = vadd.f32 %v2050_v43, %v4680_v55 }
 0x159   : > { %v2133_v23 = vpop.f32.mrb[9].mxu1  ;;  %v2530_v32 = vmax.f32 %v2049_v27, 0.0  ;;  %v2132_v54 = vadd.f32 %v2131_v35, %v4672_v28 }
 0x15a   : > { %v2531_v11 = vmax.f32 %v2051_v46, 0.0  ;;  %v2054_v18 = vpop.f32.mrb[12].mxu0  ;;  %v2134_v22 = vadd.f32 %v2133_v23, %v4672_v28 }
 0x15b   : > { %v3367_v6 = vpack.c.bf16 %v2530_v32, %v2514_v47  ;;  %v2056_v52 = vpop.f32.mrb[13].mxu0  ;;  %v2055_v59 = vadd.f32 %v2054_v18, %v4675_v36  ;;  %v2516_v5 = vmax.f32 %v2132_v54, 0.0 }
 0x15c   : > { %v2137_v58 = vpop.f32.mrb[10].mxu1  ;;  %v3365_v63 = vpack.c.bf16 %v2531_v11, %v2515_v44  ;;  %v2057_v60 = vadd.f32 %v2056_v52, %v4675_v36  ;;  %v2517_v14 = vmax.f32 %v2134_v22, 0.0 }
 0x15d   : > { %v2138_v9 = vadd.f32 %v2137_v58, %v4680_v55  ;;  %v2139_v38 = vpop.f32.mrb[11].mxu1  ;;  %v2546_v48 = vmax.f32 %v2055_v59, 0.0 }
 0x15e   : > { %v2140_v62 = vadd.f32 %v2139_v38, %v4680_v55  ;;  %v2060_v57 = vpop.f32.mrb[14].mxu0  ;;  %3366 = vmatprep.subr.bf16.mxu0 %v3365_v63  ;;  %v2547_v42 = vmax.f32 %v2057_v60, 0.0 }
 0x15f   : > { %v2532_v1 = vmax.f32 %v2138_v9, 0.0  ;;  %v2061_v39 = vadd.f32 %v2060_v57, %v4688_v24  ;;  %v2062_v40 = vpop.f32.mrb[15].mxu0  ;;  %3368 = vmatpush1.bf16.msra.mxu0 %v3367_v6 }
 0x160   : > { %v2533_v20 = vmax.f32 %v2140_v62, 0.0  ;;  %v2143_v13 = vpop.f32.mrb[12].mxu1  ;;  %v2063_v53 = vadd.f32 %v2062_v40, %v4688_v24 }
 0x161   : > { %v3375_v15 = vpack.c.bf16 %v2532_v1, %v2516_v5  ;;  %v2145_v61 = vpop.f32.mrb[13].mxu1  ;;  %v2562_v45 = vmax.f32 %v2061_v39, 0.0  ;;  %v2144_v12 = vadd.f32 %v2143_v13, %v4675_v36 }
 0x162   : > { %v3373_v41 = vpack.c.bf16 %v2533_v20, %v2517_v14  ;;  %v2563_v50 = vmax.f32 %v2063_v53, 0.0  ;;  %v2146_v33 = vadd.f32 %v2145_v61, %v4675_v36 }
 0x163   : > { %v3371_v17 = vpack.c.bf16 %v2562_v45, %v2546_v48  ;;  %v2548_v26 = vmax.f32 %v2144_v12, 0.0 }
 0x164   : > { %v2149_v8 = vpop.f32.mrb[14].mxu1  ;;  %3374 = vmatprep.subr.bf16.mxu1 %v3373_v41  ;;  %v3369_v0 = vpack.c.bf16 %v2563_v50, %v2547_v42  ;;  %v2549_v16 = vmax.f32 %v2146_v33, 0.0 }
 0x165   : > { %v2150_v49 = vadd.f32 %v2149_v8, %v4688_v24  ;;  %v2151_v4 = vpop.f32.mrb[15].mxu1  ;;  %3376 = vmatpush1.bf16.msra.mxu1 %v3375_v15 }
 0x166   : > { %v2152_v25 = vadd.f32 %v2151_v4, %v4688_v24  ;;  %3370 = vmatprep.subr.bf16.mxu0 %v3369_v0 }
 0x167   : > { %v2564_v29 = vmax.f32 %v2150_v49, 0.0  ;;  %3372 = vmatpush1.bf16.msra.mxu0 %v3371_v17 }
 0x168   : > { %v2565_v30 = vmax.f32 %v2152_v25, 0.0 }
 0x169   : > { %v3379_v3 = vpack.c.bf16 %v2564_v29, %v2548_v26 }
 0x16a   : > { %v3377_v10 = vpack.c.bf16 %v2565_v30, %v2549_v16  ;;  %3304 = vmatmul.mubr.msk.f32.vlgmr.msra.gmra.mrb[34].mxu0 %vm2581_vm8, %v4699_v56 }
 0x16b   : > { %2933 = vmatprep.mubr.f32.mxu0 %v3562_v2 }
 0x16c   : > { %3378 = vmatprep.subr.bf16.mxu1 %v3377_v10 }
 0x16d   : > { %3380 = vmatpush1.bf16.msra.mxu1 %v3379_v3 }
 0x170   : > { %3305 = vmatmul.mubr.msk.f32.vlgmr.msra.gmra.mrb[34].mxu1 %vm2581_vm8, %v4699_v56 }
 0x171   : > { %3004 = vmatprep.mubr.f32.mxu1 %v3562_v2 }
 0x174   : > { %v2220_v19 = vpop.f32.mrb[16].mxu0 }
 0x175   : > { %v2222_v34 = vpop.f32.mrb[17].mxu0  ;;  %v2221_v7 = vadd.f32 %v2220_v19, %v4672_v28 }
 0x176   : > { %v2223_v31 = vadd.f32 %v2222_v34, %v4672_v28 }
 0x177   : > { %v2518_v43 = vmax.f32 %v2221_v7, 0.0 }
 0x178   : > { %v2226_v21 = vpop.f32.mrb[18].mxu0  ;;  %v2519_v47 = vmax.f32 %v2223_v31, 0.0 }
 0x179   : > { %v2227_v37 = vadd.f32 %v2226_v21, %v4680_v55  ;;  %v2228_v51 = vpop.f32.mrb[19].mxu0 }
 0x17a   : > { %v2229_v27 = vadd.f32 %v2228_v51, %v4680_v55 }
 0x17b   : > { %v2534_v35 = vmax.f32 %v2227_v37, 0.0 }
 0x17c   : > { %v2309_v46 = vpop.f32.mrb[16].mxu1  ;;  %v2535_v23 = vmax.f32 %v2229_v27, 0.0 }
 0x17d   : > { %v2311_v32 = vpop.f32.mrb[17].mxu1  ;;  %v3383_v44 = vpack.c.bf16 %v2534_v35, %v2518_v43  ;;  %v2232_v18 = vpop.f32.mrb[20].mxu0  ;;  %v2310_v6 = vadd.f32 %v2309_v46, %v4672_v28 }
 0x17e   : > { %v3381_v11 = vpack.c.bf16 %v2535_v23, %v2519_v47  ;;  %v2234_v54 = vpop.f32.mrb[21].mxu0  ;;  %v2312_v52 = vadd.f32 %v2311_v32, %v4672_v28  ;;  %v2233_v9 = vadd.f32 %v2232_v18, %v4675_v36 }
 0x17f   : > { %v2235_v59 = vadd.f32 %v2234_v54, %v4675_v36  ;;  %v2520_v60 = vmax.f32 %v2310_v6, 0.0 }
 0x180   : > { %3382 = vmatprep.subr.bf16.mxu0 %v3381_v11  ;;  %v2521_v39 = vmax.f32 %v2312_v52, 0.0  ;;  %v2550_v53 = vmax.f32 %v2233_v9, 0.0 }
 0x181   : > { %v2315_v22 = vpop.f32.mrb[18].mxu1  ;;  %3384 = vmatpush1.bf16.msra.mxu0 %v3383_v44  ;;  %v2551_v45 = vmax.f32 %v2235_v59, 0.0 }
 0x182   : > { %v2316_v58 = vadd.f32 %v2315_v22, %v4680_v55  ;;  %v2317_v63 = vpop.f32.mrb[19].mxu1 }
 0x183   : > { %v2318_v38 = vadd.f32 %v2317_v63, %v4680_v55  ;;  %v2238_v62 = vpop.f32.mrb[22].mxu0 }
 0x184   : > { %v2536_v57 = vmax.f32 %v2316_v58, 0.0  ;;  %v2239_v5 = vadd.f32 %v2238_v62, %v4688_v24  ;;  %v2240_v1 = vpop.f32.mrb[23].mxu0 }
 0x185   : > { %v2537_v40 = vmax.f32 %v2318_v38, 0.0  ;;  %v2321_v14 = vpop.f32.mrb[20].mxu1  ;;  %v2241_v20 = vadd.f32 %v2240_v1, %v4688_v24 }
 0x186   : > { %v3391_v13 = vpack.c.bf16 %v2536_v57, %v2520_v60  ;;  %v2323_v15 = vpop.f32.mrb[21].mxu1  ;;  %v2566_v48 = vmax.f32 %v2239_v5, 0.0  ;;  %v2322_v42 = vadd.f32 %v2321_v14, %v4675_v36 }
 0x187   : > { %v3389_v61 = vpack.c.bf16 %v2537_v40, %v2521_v39  ;;  %v2567_v41 = vmax.f32 %v2241_v20, 0.0  ;;  %v2324_v12 = vadd.f32 %v2323_v15, %v4675_v36 }
 0x188   : > { %v3387_v50 = vpack.c.bf16 %v2566_v48, %v2550_v53  ;;  %v2552_v4 = vmax.f32 %v2322_v42, 0.0 }
 0x189   : > { %v2327_v17 = vpop.f32.mrb[22].mxu1  ;;  %3390 = vmatprep.subr.bf16.mxu1 %v3389_v61  ;;  %v3385_v33 = vpack.c.bf16 %v2567_v41, %v2551_v45  ;;  %v2553_v26 = vmax.f32 %v2324_v12, 0.0 }
 0x18a   : > { %v2328_v8 = vadd.f32 %v2327_v17, %v4688_v24  ;;  %v2329_v0 = vpop.f32.mrb[23].mxu1  ;;  %3392 = vmatpush1.bf16.msra.mxu1 %v3391_v13 }
 0x18b   : > { %v2330_v49 = vadd.f32 %v2329_v0, %v4688_v24  ;;  %3386 = vmatprep.subr.bf16.mxu0 %v3385_v33 }
 0x18c   : > { %v2568_v25 = vmax.f32 %v2328_v8, 0.0  ;;  %3388 = vmatpush1.bf16.msra.mxu0 %v3387_v50 }
 0x18d   : > { %v2569_v29 = vmax.f32 %v2330_v49, 0.0 }
 0x18e   : > { %v3395_v16 = vpack.c.bf16 %v2568_v25, %v2552_v4  ;;  %v2579_v4 = vpop.permute.xlu0 %2578 }
 0x18f   : > { %v3393_v30 = vpack.c.bf16 %v2569_v29, %v2553_v26  ;;  %3306 = vmatmul.mubr.msk.f32.vlgmr.msra.gmra.mrb[36].mxu0 %vm2581_vm8, %v4699_v56 }
 0x190   : > { %3075 = vmatprep.mubr.f32.mxu0 %v3562_v2 }
 0x191   : > { %3394 = vmatprep.subr.bf16.mxu1 %v3393_v30 }
 0x192   : > { %v2398_v3 = vpop.f32.mrb[24].mxu0  ;;  %3396 = vmatpush1.bf16.msra.mxu1 %v3395_v16 }
 0x193   : > { %v2400_v10 = vpop.f32.mrb[25].mxu0  ;;  %v2399_v19 = vadd.f32 %v2398_v3, %v4672_v28 }
 0x194   : > { %v2401_v34 = vadd.f32 %v2400_v10, %v4672_v28 }
 0x195   : > { %3307 = vmatmul.mubr.msk.f32.vlgmr.msra.gmra.mrb[36].mxu1 %vm2581_vm8, %v4699_v56  ;;  %v2522_v51 = vmax.f32 %v2399_v19, 0.0 }
 0x196   : > { %v2404_v7 = vpop.f32.mrb[26].mxu0  ;;  %3146 = vmatprep.mubr.f32.mxu1 %v3562_v2  ;;  %v2523_v35 = vmax.f32 %v2401_v34, 0.0 }
 0x197   : > { %v2405_v31 = vadd.f32 %v2404_v7, %v4680_v55  ;;  %v2406_v21 = vpop.f32.mrb[27].mxu0 }
 0x198   : > { %v2407_v37 = vadd.f32 %v2406_v21, %v4680_v55 }
 0x199   : > { %v2538_v27 = vmax.f32 %v2405_v31, 0.0  ;;  %v2487_v43 = vpop.f32.mrb[24].mxu1 }
 0x19a   : > { %v2539_v46 = vmax.f32 %v2407_v37, 0.0  ;;  %v2410_v47 = vpop.f32.mrb[28].mxu0  ;;  %v2489_v23 = vpop.f32.mrb[25].mxu1  ;;  %v2488_v18 = vadd.f32 %v2487_v43, %v4672_v28 }
 0x19b   : > { %v3399_v32 = vpack.c.bf16 %v2538_v27, %v2522_v51  ;;  %v2412_v44 = vpop.f32.mrb[29].mxu0  ;;  %v2411_v54 = vadd.f32 %v2410_v47, %v4675_v36  ;;  %v2490_v2 = vadd.f32 %v2489_v23, %v4672_v28 }
 0x19c   : > { %v3397_v11 = vpack.c.bf16 %v2539_v46, %v2523_v35  ;;  %v2413_v52 = vadd.f32 %v2412_v44, %v4675_v36  ;;  %v2524_v60 = vmax.f32 %v2488_v18, 0.0 }
 0x19d   : > { %v2493_v6 = vpop.f32.mrb[26].mxu1  ;;  %v2554_v5 = vmax.f32 %v2411_v54, 0.0  ;;  %v2525_v1 = vmax.f32 %v2490_v2, 0.0 }
 0x19e   : > { %v2416_v22 = vpop.f32.mrb[30].mxu0  ;;  %3398 = vmatprep.subr.bf16.mxu0 %v3397_v11  ;;  %v2494_v58 = vadd.f32 %v2493_v6, %v4680_v55  ;;  %v2495_v63 = vpop.f32.mrb[27].mxu1  ;;  %v2555_v14 = vmax.f32 %v2413_v52, 0.0 }
 0x19f   : > { %v2417_v9 = vadd.f32 %v2416_v22, %v4688_v24  ;;  %v2418_v38 = vpop.f32.mrb[31].mxu0  ;;  %3400 = vmatpush1.bf16.msra.mxu0 %v3399_v32  ;;  %v2496_v59 = vadd.f32 %v2495_v63, %v4680_v55 }
 0x1a0   : > { %v2419_v62 = vadd.f32 %v2418_v38, %v4688_v24  ;;  %v2540_v57 = vmax.f32 %v2494_v58, 0.0 }
 0x1a1   : > { %v2570_v28 = vmax.f32 %v2417_v9, 0.0  ;;  %v2541_v39 = vmax.f32 %v2496_v59, 0.0  ;;  %v2499_v40 = vpop.f32.mrb[28].mxu1 }
 0x1a2   : > { %v2571_v20 = vmax.f32 %v2419_v62, 0.0  ;;  %v3407_v13 = vpack.c.bf16 %v2540_v57, %v2524_v60  ;;  %v2501_v53 = vpop.f32.mrb[29].mxu1  ;;  %v2500_v45 = vadd.f32 %v2499_v40, %v4675_v36 }
 0x1a3   : > { %v3403_v15 = vpack.c.bf16 %v2570_v28, %v2554_v5  ;;  %v3405_v48 = vpack.c.bf16 %v2541_v39, %v2525_v1  ;;  %v2502_v55 = vadd.f32 %v2501_v53, %v4675_v36 }
 0x1a4   : > { %v3401_v61 = vpack.c.bf16 %v2571_v20, %v2555_v14  ;;  %v2556_v17 = vmax.f32 %v2500_v45, 0.0 }
 0x1a5   : > { %v2505_v41 = vpop.f32.mrb[30].mxu1  ;;  %3406 = vmatprep.subr.bf16.mxu1 %v3405_v48  ;;  %v2557_v8 = vmax.f32 %v2502_v55, 0.0 }
 0x1a6   : > { %3402 = vmatprep.subr.bf16.mxu0 %v3401_v61  ;;  %v2506_v42 = vadd.f32 %v2505_v41, %v4688_v24  ;;  %v2507_v50 = vpop.f32.mrb[31].mxu1  ;;  %3408 = vmatpush1.bf16.msra.mxu1 %v3407_v13 }
 0x1a7   : > { %3404 = vmatpush1.bf16.msra.mxu0 %v3403_v15  ;;  %v2508_v12 = vadd.f32 %v2507_v50, %v4688_v24 }
 0x1a8   : > { %v2572_v33 = vmax.f32 %v2506_v42, 0.0 }
 0x1a9   : > { %v2573_v0 = vmax.f32 %v2508_v12, 0.0 }
 0x1aa   : > { %3308 = vmatmul.mubr.msk.f32.vlgmr.msra.gmra.mrb[38].mxu0 %vm2581_vm8, %v4699_v56  ;;  %v3411_v49 = vpack.c.bf16 %v2572_v33, %v2556_v17 }
 0x1ab   : > { %v3409_v36 = vpack.c.bf16 %v2573_v0, %v2557_v8 }
 0x1ad   : > { %3410 = vmatprep.subr.bf16.mxu1 %v3409_v36 }
 0x1ae   : > { %3412 = vmatpush1.bf16.msra.mxu1 %v3411_v49 }
 0x1b1   : > { %3309 = vmatmul.mubr.msk.f32.vlgmr.msra.gmra.mrb[38].mxu1 %vm2581_vm8, %v4699_v56 }
 0x222   : > { %v2651_v25 = vpop.f32.mrb[32].mxu0 }
 0x223   : > { %v2652_v26 = vadd.f32 %v2651_v25, %v2579_v4  ;;  %v2653_v29 = vpop.f32.mrb[33].mxu0 }
 0x224   : > { %v2654_v24 = vadd.f32 %v2653_v29, %v2579_v4 }
 0x225   : > { %3153 = vst [vmem:[%s4772_s28] sm:$0xff] %v2652_v26 }
 0x226   : > { %v2722_v16 = vpop.f32.mrb[32].mxu1  ;;  %3154 = vst [vmem:[%s4772_s28 + $0x8] sm:$0xff] %v2654_v24 }
 0x227   : > { %v2723_v30 = vadd.f32 %v2722_v16, %v2579_v4  ;;  %v2724_v56 = vpop.f32.mrb[33].mxu1 }
 0x228   : > { %v2725_v3 = vadd.f32 %v2724_v56, %v2579_v4 }
 0x229   : > { %3155 = vst [vmem:[%s4772_s28 + $0x10] sm:$0xff] %v2723_v30 }
 0x22a   : > { %3156 = vst [vmem:[%s4772_s28 + $0x18] sm:$0xff] %v2725_v3 }
 0x23d   : > { %v2793_v10 = vpop.f32.mrb[34].mxu0 }
 0x23e   : > { %v2794_v19 = vadd.f32 %v2793_v10, %v2579_v4  ;;  %v2795_v34 = vpop.f32.mrb[35].mxu0 }
 0x23f   : > { %v2796_v7 = vadd.f32 %v2795_v34, %v2579_v4 }
 0x240   : > { %3157 = vst [vmem:[%s4772_s28 + $0x20] sm:$0xff] %v2794_v19 }
 0x241   : > { %3158 = vst [vmem:[%s4772_s28 + $0x28] sm:$0xff] %v2796_v7 }
 0x243   : > { %v2864_v31 = vpop.f32.mrb[34].mxu1 }
 0x244   : > { %v2865_v21 = vadd.f32 %v2864_v31, %v2579_v4  ;;  %v2866_v37 = vpop.f32.mrb[35].mxu1 }
 0x245   : > { %v2867_v51 = vadd.f32 %v2866_v37, %v2579_v4 }
 0x246   : > { %3159 = vst [vmem:[%s4772_s28 + $0x30] sm:$0xff] %v2865_v21 }
 0x247   : > { %3160 = vst [vmem:[%s4772_s28 + $0x38] sm:$0xff] %v2867_v51 }
 0x262   : > { %v2935_v27 = vpop.f32.mrb[36].mxu0 }
 0x263   : > { %v2936_v43 = vadd.f32 %v2935_v27, %v2579_v4  ;;  %v2937_v35 = vpop.f32.mrb[37].mxu0 }
 0x264   : > { %v2938_v46 = vadd.f32 %v2937_v35, %v2579_v4 }
 0x265   : > { %3161 = vst [vmem:[%s4772_s28 + $0x40] sm:$0xff] %v2936_v43 }
 0x266   : > { %3162 = vst [vmem:[%s4772_s28 + $0x48] sm:$0xff] %v2938_v46 }
 0x268   : > { %v3006_v47 = vpop.f32.mrb[36].mxu1 }
 0x269   : > { %v3007_v23 = vadd.f32 %v3006_v47, %v2579_v4  ;;  %v3008_v32 = vpop.f32.mrb[37].mxu1 }
 0x26a   : > { %v3009_v44 = vadd.f32 %v3008_v32, %v2579_v4 }
 0x26b   : > { %3163 = vst [vmem:[%s4772_s28 + $0x50] sm:$0xff] %v3007_v23 }
 0x26c   : > { %3164 = vst [vmem:[%s4772_s28 + $0x58] sm:$0xff] %v3009_v44 }
 0x27d   : > { %v3077_v11 = vpop.f32.mrb[38].mxu0 }
 0x27e   : > { %v3078_v18 = vadd.f32 %v3077_v11, %v2579_v4  ;;  %v3079_v54 = vpop.f32.mrb[39].mxu0 }
 0x27f   : > { %v3080_v2 = vadd.f32 %v3079_v54, %v2579_v4 }
 0x280   : > { %3165 = vst [vmem:[%s4772_s28 + $0x60] sm:$0xff] %v3078_v18 }
 0x281   : > { %3166 = vst [vmem:[%s4772_s28 + $0x68] sm:$0xff] %v3080_v2 }
 0x284   : > { %v3148_v6 = vpop.f32.mrb[38].mxu1 }
 0x285   : > { %v3149_v52 = vadd.f32 %v3148_v6, %v2579_v4  ;;  %v3150_v22 = vpop.f32.mrb[39].mxu1 }
 0x286   : > { %v3151_v58 = vadd.f32 %v3150_v22, %v2579_v4 }
 0x287   : > { %3167 = vst [vmem:[%s4772_s28 + $0x70] sm:$0xff] %v3149_v52 }
 0x288   : > { %3168 = vst [vmem:[%s4772_s28 + $0x78] sm:$0xff] %v3151_v58 }
 0x289   : > { %3506 = shalt.err (!%p3503_p3)
}
 0x28a   : > { %s3507_s13 = scalar_lea.hbm %s4793_s11, 2048  ;;  %s3511_s15 = scalar_lea.hbm %s4843_s5, 6144 }
 0x28b   : > { %p3508_p5 = scmp.ne.s32.totalorder %s4793_s11, %s3507_s13  ;;  %p3512_p13 = scmp.lt.u32.totalorder %s4793_s11, %s4843_s5 }
 0x28c   : > { %p3513_p0 = scmp.lt.u32.totalorder %s3511_s15, %s3507_s13  ;;  %p3515_p6 = scmp.lt.u32.totalorder %s3507_s13, %s4793_s11 }
 0x28d   : > { %p3509_p7 = pnand %p3508_p5, %p4852_p10 }
 0x28e   : > { %p3514_p2 = por %p3513_p0, %p3512_p13 }
 0x28f   : > { %p3510_p8 = pneg %p3509_p7 }
 0x290   : > { %p3516_p11 = por %p3515_p6, %p3514_p2 }
 0x292   : > { %p3517_p12 = pnand %p3516_p11, %p3510_p8 }
 0x294   : > { %3520 = shalt.err (!%p3517_p12)
}
 0x295   : > { %3415 = dma.vmem_to_hbm [thread:$0]  (%p4852_p10), %s4795_s7, 2048, %s4793_s11, %s3170_s17  }
 0x296 PF: > { %p3426_p4 = scmp.ge.s32.totalorder %s3559_s21, 2  ;;  %s3196_s28 = sand.u32 1, %s3547_s18  }
 0x297   : > { %p4853_p9 = scmp.ne.s32.totalorder %s4848_s6, 0  ;;  %s3197_s8 = scalar_lea.sflag [#allocation4], %s3196_s28 }
 0x299   : > { %p3422_p1 = pnand %p3426_p4, %p4853_p9 }
 0x29b   : > { %3542 = dma.done.wait (!%p3422_p1), %s3197_s8, 2048  }
 0x29c   : > { %3544 = vsyncadd (!%p3422_p1), %s3197_s8, 4294965248  ;;  %p18_p3 = scmp.ge.s32.totalorder %s3620_s24, 5   ;;  %s4854_s18 = smov %s3551_s19 }
 0x29d   : > { %s4855_s19 = smov %s3555_s20  ;;  %s4856_s20 = smov %s3632_s27 }
 0x29e   : > { %s4857_s21 = smov %s3620_s24  ;;  %20 = sbr.rel (!%p18_p3) target bundleno = 5 (0x5), region = 90 }
 0x2a5   :  { %3202 = vsyncpa [#allocation3], 1 }
 0x2a6   :  { %3204 = vsyncpa [#allocation3 + $0x1], 1 }
 0x2a7   :  { %3205 = vsyncpa [#allocation4], 1 }
 0x2a8   :  { %3207 = vsyncpa [#allocation4 + $0x1], 1 }

</bundles_post_ra>
